<compile_context>
chip_gen: v7x
topology: tpu7x:2x2x1
jax: 0.10.0
libtpu: 0.0.40
codegen_flags: <defaults>
</compile_context>

<pallas_src>
import math

import jax
import jax.numpy as jnp
from jax.experimental import pallas as pl
from jax.experimental.pallas import tpu as pltpu


def _dg(x, w):
    """x @ w contracting x's last dim with w's first dim, f32 accumulation."""
    return jax.lax.dot_general(
        x, w, (((x.ndim - 1,), (0,)), ((), ())),
        preferred_element_type=jnp.float32)


# ----------------------------------------------------------------------------
# Fused kernel: all-trait cross-attention + FFN + trait MLP heads + CRF NLL
# ----------------------------------------------------------------------------
def make_fused_kernel(B, BP, Sc, D, T, L, HID):
    TD = T * D

    def kernel(conv_ref, resp_ref, lab_ref, wqkv_ref, big_ref, w2_ref, b2_ref,
               vecs_ref, em_ref, nll_ref):
        f32 = jnp.float32
        bf16 = jnp.bfloat16

        conv = conv_ref[...]                        # (BP*Sc, D) bf16  conversation (k/v src)
        resp = resp_ref[...]                        # (BP, D)    bf16  response (q, seq len 1)

        # packed weight views (static, tile-aligned slices of VMEM refs)
        wq = wqkv_ref[:, 0:TD]                      # (D, TD)   bf16
        wkv = wqkv_ref[:, TD:3 * TD]                # (D, 2TD)  bf16  fused [Wk | Wv]
        mhead = big_ref[0:TD]                       # (TD, TD)  bf16  head group-sum+bcast
        wd = big_ref[TD:2 * TD]                     # Attention.dense          (block-diag)
        wf = big_ref[2 * TD:3 * TD]                 # essay ffn                (block-diag)
        w1 = big_ref[3 * TD:4 * TD]                 # final_dense[0] (folded)  (block-diag)
        w3 = big_ref[4 * TD:4 * TD + HID]           # (HID, TD) final_dense[4] (block-diag)
        w2 = w2_ref[...]                            # (TD, HID) bf16
        b2 = b2_ref[...]                            # (1, HID)  f32
        vecs = vecs_ref[...]                        # (10+2L, TD) f32 merged small params
        bq, bk, bv = vecs[0:1], vecs[1:2], vecs[2:3]
        bd, bff, b1 = vecs[3:4], vecs[4:5], vecs[5:6]
        b3 = vecs[6:7]                              # emission bias on packed lanes
        boundary = vecs[7:8]                        # CRF start/end folded onto packed lanes
        start = vecs[8:9, 0:L]
        end = vecs[9:10, 0:L]
        trans = vecs[10:10 + L, 0:L]
        exp_trans = vecs[10 + L:10 + 2 * L, 0:L]    # host-precomputed exp(trans)

        # --- all-trait multi-head cross-attention (query length == 1) ---
        q = _dg(resp, wq) + bq                                  # (BP, TD) f32
        kv = _dg(conv, wkv).reshape(BP, Sc, 2 * TD)             # one fused 256-lane K|V matmul
        k = kv[:, :, 0:TD] + bk
        v = kv[:, :, TD:2 * TD] + bv

        qk = q[:, None, :] * k                                  # (BP, Sc, TD) f32
        # per-(trait, head) logit = scaled group-sum of qk over that head's lanes,
        # broadcast back onto them -- one full 128-lane MXU matmul.
        logits = _dg(qk.reshape(BP * Sc, TD).astype(bf16),
                     mhead).reshape(BP, Sc, TD)
        m = jnp.max(logits, axis=1, keepdims=True)
        e = jnp.exp(logits - m)                                 # softmax numerators over Sc
        num = jnp.sum(e * v, axis=1)                            # (BP, TD) un-normalised attn
        den = jnp.sum(e, axis=1)                                # (BP, TD) softmax denominator
        att = num * pl.reciprocal(den, approx=True)             # EUP reciprocal, no big divide
        mh = _dg(att.astype(bf16), wd) + bd                     # Attention.dense

        # --- essay_prompt_process: dense(ReLU) + residual ---
        ffn = jnp.maximum(_dg(mh.astype(bf16), wf) + bff, 0.0) + mh

        # --- trait_process_classification.final_dense (all traits at once) ---
        # cat(x, x) @ W1 == x @ (W1[:D] + W1[D:]); w1 holds that folded sum per trait.
        h1 = jnp.maximum(_dg(ffn.astype(bf16), w1) + b1, 0.0)   # (BP, TD)
        h2 = jnp.maximum(_dg(h1.astype(bf16), w2) + b2, 0.0)    # (BP, HID)
        em = _dg(h2.astype(bf16), w3) + b3                      # (BP, TD) lane t*L+l = em[b,t,l]
        em_ref[...] = em                                        # full (8,128)-tile f32 store

        # --- fused linear-chain CRF NLL (mask = all ones, reduction = 'sum') ---
        # gold one-hot over the packed emission lanes (labels read from 1-D SMEM)
        lane = jax.lax.broadcasted_iota(jnp.int32, (1, TD), 1)
        row = jax.lax.broadcasted_iota(jnp.int32, (BP, TD), 0)
        gold = jnp.zeros((BP, TD), f32)
        for b in range(B):
            msk = lane == lab_ref[b * T]
            for t in range(1, T):
                msk = msk | (lane == (t * L + lab_ref[b * T + t]))
            gold = gold + jnp.where(row == b, msk.astype(f32), 0.0)

        # numerator: emissions + start/end (folded onto lanes) + gold transitions
        numer = jnp.sum((em + boundary) * gold, axis=1, keepdims=True)      # (BP, 1)
        for t in range(1, T):
            prev = gold[:, (t - 1) * L:t * L]                               # (BP, L)
            cur = gold[:, t * L:(t + 1) * L]
            numer = numer + jnp.sum(_dg(prev, trans) * cur, axis=1, keepdims=True)

        # partition function: exact log-sum-exp forward recursion; exp(trans) is
        # precomputed so exp only runs on (BP, L) with no (BP, L, L) intermediate.
        alpha = start + em[:, 0:L]                                          # (BP, L)
        for t in range(1, T):
            mt = jnp.max(alpha, axis=1, keepdims=True)
            alpha = (mt + jnp.log(_dg(jnp.exp(alpha - mt), exp_trans))
                     + em[:, t * L:(t + 1) * L])
        alpha = alpha + end
        mz = jnp.max(alpha, axis=1, keepdims=True)
        logz = mz + jnp.log(jnp.sum(jnp.exp(alpha - mz), axis=1, keepdims=True))

        # only the real (un-padded) batch rows contribute to the loss
        valid = (jax.lax.broadcasted_iota(jnp.int32, (BP, 1), 0) < B).astype(f32)
        nll_ref[0, 0] = -jnp.sum((numer - logz) * valid)

    return kernel


# ----------------------------------------------------------------------------
# Wrapper
# ----------------------------------------------------------------------------
def score_pred_forward(conversation, response, labels, pk):
    B, Sc, D = conversation.shape
    TD = pk['big'].shape[1]
    T = TD // D
    L = (pk['vecs'].shape[0] - 10) // 2
    HID = pk['w2'].shape[1]
    BP = ((B + 7) // 8) * 8                        # pad batch to full sublane tiles

    conv = jnp.pad(conversation, ((0, BP - B), (0, 0), (0, 0)))
    conv = conv.reshape(BP * Sc, D).astype(jnp.bfloat16)       # 2-D for the K|V matmul
    resp = jnp.pad(response[:, 0, :], ((0, BP - B), (0, 0))).astype(jnp.bfloat16)
    lab = labels.reshape(-1).astype(jnp.int32)                 # 1-D SMEM (no 2-D padding)

    vmem = pl.BlockSpec(memory_space=pltpu.MemorySpace.VMEM)
    smem = pl.BlockSpec(memory_space=pltpu.MemorySpace.SMEM)

    # TODO(synk): for large-batch use, tile BP over a ("parallel",) grid with
    # constant weight index_maps (2x on v7x's two TensorCores); at this toy size
    # a single grid-less call is fastest.
    em_pad, nll = pl.pallas_call(
        make_fused_kernel(B, BP, Sc, D, T, L, HID),
        in_specs=[vmem, vmem, smem,                # conv, resp, labels(SMEM)
                  vmem, vmem, vmem, vmem, vmem],   # wqkv, big, w2, b2, vecs
        out_specs=(vmem, smem),
        out_shape=(jax.ShapeDtypeStruct((BP, TD), jnp.float32),
                   jax.ShapeDtypeStruct((1, 1), jnp.float32)),
    )(conv, resp, lab, pk['wqkv'], pk['big'], pk['w2'], pk['b2'], pk['vecs'])

    emissions = em_pad[:B, :T * L].reshape(B, T, L)
    return emissions, nll[0, 0]


# ----------------------------------------------------------------------------
# One-time packing of per-trait parameters into the lane-packed bf16 layout
# ----------------------------------------------------------------------------
def pack_params(params, D, H):
    T = params['wq'].shape[0]
    L = params['w3'].shape[2]
    TD = T * D
    P = D // H                                    # per-head projection dim
    HID = T * params['w2'].shape[2]               # T * 256
    f32, bf16 = jnp.float32, jnp.bfloat16

    def cat_out(w):                               # (T, din, dout) -> (din, T*dout)
        Tn, din, dout = w.shape
        return jnp.transpose(w, (1, 0, 2)).reshape(din, Tn * dout)

    def block_diag(w):                            # (T, din, dout) -> (T*din, T*dout)
        Tn, din, dout = w.shape
        eye = jnp.eye(Tn, dtype=w.dtype)
        return (eye[:, None, :, None] * w[:, :, None, :]).reshape(Tn * din, Tn * dout)

    # shared-input projections, q | k | v lane-concatenated (k,v feed ONE matmul)
    wqkv = jnp.concatenate([cat_out(params['wq']), cat_out(params['wk']),
                            cat_out(params['wv'])], axis=1).astype(bf16)    # (D, 3*TD)

    # per-(trait, head) group-sum + broadcast matrix, 1/sqrt(P) scale folded in
    grp = jnp.arange(TD) // P
    mhead = (grp[:, None] == grp[None, :]).astype(f32) / math.sqrt(P)

    w3 = jnp.pad(block_diag(params['w3']), ((0, 0), (0, TD - T * L)))       # (HID, TD)
    big = jnp.concatenate([mhead,
                           block_diag(params['wd']),
                           block_diag(params['wf']),
                           block_diag(params['w1']),
                           w3], axis=0).astype(bf16)                        # (4*TD+HID, TD)

    def row(x):                                   # 1-D -> zero-padded (1, TD) f32 row
        x = jnp.asarray(x, f32).reshape(1, -1)
        return jnp.pad(x, ((0, 0), (0, TD - x.shape[1])))

    start, end, trans = params['crf_start'], params['crf_end'], params['crf_trans']
    boundary = jnp.zeros((T * L,), f32).at[0:L].add(start)
    boundary = boundary.at[(T - 1) * L:T * L].add(end)

    vecs = jnp.concatenate(
        [row(params['bq'].reshape(-1)), row(params['bk'].reshape(-1)),
         row(params['bv'].reshape(-1)), row(params['bd'].reshape(-1)),
         row(params['bf'].reshape(-1)), row(params['b1'].reshape(-1)),
         row(params['b3'].reshape(-1)), row(boundary),
         row(start), row(end)]
        + [row(trans[i]) for i in range(L)]
        + [row(jnp.exp(trans)[i]) for i in range(L)], axis=0)               # (10+2L, TD)

    return dict(
        wqkv=wqkv,                                                          # (D, 3*TD)  bf16
        big=big,                                                            # (4TD+HID, TD) bf16
        w2=block_diag(params['w2']).astype(bf16),                           # (TD, HID)  bf16
        b2=params['b2'].reshape(1, HID).astype(f32),                        # (1, HID)   f32
        vecs=vecs,                                                          # (10+2L, TD) f32
    )


# ----------------------------------------------------------------------------
# Deterministic parameter construction (synthetic, xavier-uniform style)
# ----------------------------------------------------------------------------
def _xavier(key, shape):
    fan_in, fan_out = shape[-2], shape[-1]
    a = math.sqrt(6.0 / (fan_in + fan_out))
    return jax.random.uniform(key, shape, jnp.float32, -a, a)


def init_params(key, T, D, H, L=3):
    ks = jax.random.split(key, 16)

    def unif(k, shape, a):
        return jax.random.uniform(k, shape, jnp.float32, -a, a)

    w1_full = _xavier(ks[5], (T, 2 * D, D))       # Linear(2D -> D)
    return dict(
        # attention layers: xavier weights, zero biases (matches _init_weights)
        wq=_xavier(ks[0], (T, D, D)), bq=jnp.zeros((T, 1, D), jnp.float32),
        wk=_xavier(ks[1], (T, D, D)), bk=jnp.zeros((T, 1, D), jnp.float32),
        wv=_xavier(ks[2], (T, D, D)), bv=jnp.zeros((T, 1, D), jnp.float32),
        wd=_xavier(ks[3], (T, D, D)), bd=jnp.zeros((T, 1, D), jnp.float32),
        # dense / MLP layers: small non-zero biases to exercise the bias path
        wf=_xavier(ks[4], (T, D, D)), bf=unif(ks[11], (T, 1, D), 1.0 / math.sqrt(D)),
        # effective weight for cat(x, x) @ W1  ==  x @ (W1_top + W1_bot)
        w1=w1_full[:, :D, :] + w1_full[:, D:, :],
        b1=unif(ks[12], (T, 1, D), 1.0 / math.sqrt(2 * D)),
        w2=_xavier(ks[6], (T, D, 256)), b2=unif(ks[13], (T, 1, 256), 1.0 / math.sqrt(D)),
        w3=_xavier(ks[7], (T, 256, L)), b3=unif(ks[14], (T, 1, L), 1.0 / 16.0),
        crf_trans=unif(ks[8], (L, L), 0.1),
        crf_start=unif(ks[9], (L,), 0.1),
        crf_end=unif(ks[10], (L,), 0.1),
    )


if __name__ == "__main__":
    B, Sc, D, H, T, L = 2, 8, 32, 8, 4, 3         # embed_dim=32, output_dim=4 traits

    key = jax.random.PRNGKey(0)
    k_params, k_conv, k_resp, k_lab = jax.random.split(key, 4)

    params = init_params(k_params, T, D, H, L)
    packed = pack_params(params, D, H)            # one-time layout / dtype packing
    conversation = jax.random.normal(k_conv, (B, Sc, D), jnp.float32)
    response = jax.random.normal(k_resp, (B, 1, D), jnp.float32)
    labels = jax.random.randint(k_lab, (B, T), 0, L, jnp.int32)

    fwd = jax.jit(score_pred_forward)
    emissions, crf_nll = fwd(conversation, response, labels, packed)
    jax.block_until_ready((emissions, crf_nll))

    assert emissions.shape == (B, T, L)
    assert crf_nll.shape == ()
    assert bool(jnp.all(jnp.isfinite(emissions))) and bool(jnp.isfinite(crf_nll))
    print("KERNEL_OK")
</pallas_src>

<mosaic_0001>
module attributes {stable_mosaic.version = 11 : i64} {
  func.func @kernel(%arg0: memref<64x32xbf16, #tpu.memory_space<vmem>>, %arg1: memref<8x32xbf16, #tpu.memory_space<vmem>>, %arg2: memref<8xi32, #tpu.memory_space<smem>>, %arg3: memref<32x384xbf16, #tpu.memory_space<vmem>>, %arg4: memref<1536x128xbf16, #tpu.memory_space<vmem>>, %arg5: memref<128x1024xbf16, #tpu.memory_space<vmem>>, %arg6: memref<1x1024xf32, #tpu.memory_space<vmem>>, %arg7: memref<16x128xf32, #tpu.memory_space<vmem>>, %arg8: memref<8x128xf32, #tpu.memory_space<vmem>>, %arg9: memref<1x1xf32, #tpu.memory_space<smem>>) attributes {dimension_semantics = [], scalar_prefetch = 0 : i64, scratch_operands = 0 : i64, tpu.core_type = #tpu.core_type<tc>} {
    %c0 = arith.constant 0 : index
    %c0_0 = arith.constant 0 : index
    %0 = vector.load %arg0[%c0, %c0_0] : memref<64x32xbf16, #tpu.memory_space<vmem>>, vector<64x32xbf16>
    %c0_1 = arith.constant 0 : index
    %c0_2 = arith.constant 0 : index
    %1 = vector.load %arg1[%c0_1, %c0_2] : memref<8x32xbf16, #tpu.memory_space<vmem>>, vector<8x32xbf16>
    %c0_3 = arith.constant 0 : index
    %c0_4 = arith.constant 0 : index
    %2 = vector.load %arg3[%c0_3, %c0_4] : memref<32x384xbf16, #tpu.memory_space<vmem>>, vector<32x128xbf16>
    %c0_5 = arith.constant 0 : index
    %c128 = arith.constant 128 : index
    %3 = vector.load %arg3[%c0_5, %c128] : memref<32x384xbf16, #tpu.memory_space<vmem>>, vector<32x256xbf16>
    %c0_6 = arith.constant 0 : index
    %c0_7 = arith.constant 0 : index
    %4 = vector.load %arg4[%c0_6, %c0_7] : memref<1536x128xbf16, #tpu.memory_space<vmem>>, vector<128x128xbf16>
    %c128_8 = arith.constant 128 : index
    %c0_9 = arith.constant 0 : index
    %5 = vector.load %arg4[%c128_8, %c0_9] : memref<1536x128xbf16, #tpu.memory_space<vmem>>, vector<128x128xbf16>
    %c256 = arith.constant 256 : index
    %c0_10 = arith.constant 0 : index
    %6 = vector.load %arg4[%c256, %c0_10] : memref<1536x128xbf16, #tpu.memory_space<vmem>>, vector<128x128xbf16>
    %c384 = arith.constant 384 : index
    %c0_11 = arith.constant 0 : index
    %7 = vector.load %arg4[%c384, %c0_11] : memref<1536x128xbf16, #tpu.memory_space<vmem>>, vector<128x128xbf16>
    %c512 = arith.constant 512 : index
    %c0_12 = arith.constant 0 : index
    %8 = vector.load %arg4[%c512, %c0_12] : memref<1536x128xbf16, #tpu.memory_space<vmem>>, vector<1024x128xbf16>
    %c0_13 = arith.constant 0 : index
    %c0_14 = arith.constant 0 : index
    %9 = vector.load %arg5[%c0_13, %c0_14] : memref<128x1024xbf16, #tpu.memory_space<vmem>>, vector<128x1024xbf16>
    %c0_15 = arith.constant 0 : index
    %c0_16 = arith.constant 0 : index
    %10 = vector.load %arg6[%c0_15, %c0_16] : memref<1x1024xf32, #tpu.memory_space<vmem>>, vector<1x1024xf32>
    %c0_17 = arith.constant 0 : index
    %c0_18 = arith.constant 0 : index
    %11 = vector.load %arg7[%c0_17, %c0_18] : memref<16x128xf32, #tpu.memory_space<vmem>>, vector<16x128xf32>
    %12 = vector.extract_strided_slice %11 {offsets = [0, 0], sizes = [1, 128], strides = [1, 1]} : vector<16x128xf32> to vector<1x128xf32>
    %13 = vector.extract_strided_slice %11 {offsets = [1, 0], sizes = [1, 128], strides = [1, 1]} : vector<16x128xf32> to vector<1x128xf32>
    %14 = vector.extract_strided_slice %11 {offsets = [2, 0], sizes = [1, 128], strides = [1, 1]} : vector<16x128xf32> to vector<1x128xf32>
    %15 = vector.extract_strided_slice %11 {offsets = [3, 0], sizes = [1, 128], strides = [1, 1]} : vector<16x128xf32> to vector<1x128xf32>
    %16 = vector.extract_strided_slice %11 {offsets = [4, 0], sizes = [1, 128], strides = [1, 1]} : vector<16x128xf32> to vector<1x128xf32>
    %17 = vector.extract_strided_slice %11 {offsets = [5, 0], sizes = [1, 128], strides = [1, 1]} : vector<16x128xf32> to vector<1x128xf32>
    %18 = vector.extract_strided_slice %11 {offsets = [6, 0], sizes = [1, 128], strides = [1, 1]} : vector<16x128xf32> to vector<1x128xf32>
    %19 = vector.extract_strided_slice %11 {offsets = [7, 0], sizes = [1, 128], strides = [1, 1]} : vector<16x128xf32> to vector<1x128xf32>
    %20 = vector.extract_strided_slice %11 {offsets = [8, 0], sizes = [1, 3], strides = [1, 1]} : vector<16x128xf32> to vector<1x3xf32>
    %21 = vector.extract_strided_slice %11 {offsets = [9, 0], sizes = [1, 3], strides = [1, 1]} : vector<16x128xf32> to vector<1x3xf32>
    %22 = vector.extract_strided_slice %11 {offsets = [10, 0], sizes = [3, 3], strides = [1, 1]} : vector<16x128xf32> to vector<3x3xf32>
    %23 = vector.extract_strided_slice %11 {offsets = [13, 0], sizes = [3, 3], strides = [1, 1]} : vector<16x128xf32> to vector<3x3xf32>
    %cst = arith.constant dense<0.000000e+00> : vector<8x128xf32>
    %24 = tpu.matmul %1, %2, %cst {dimension_numbers = #tpu.dot_dimension_numbers<[1], [0], [0], [1], [0, 0, 1, 1], [], []>} : vector<8x32xbf16>, vector<32x128xbf16>, vector<8x128xf32> -> vector<8x128xf32>
    %25 = vector.broadcast %12 : vector<1x128xf32> to vector<8x128xf32>
    %26 = arith.addf %24, %25 : vector<8x128xf32>
    %cst_19 = arith.constant dense<0.000000e+00> : vector<64x256xf32>
    %27 = tpu.matmul %0, %3, %cst_19 {dimension_numbers = #tpu.dot_dimension_numbers<[1], [0], [0], [1], [0, 0, 1, 1], [], []>} : vector<64x32xbf16>, vector<32x256xbf16>, vector<64x256xf32> -> vector<64x256xf32>
    %28 = vector.shape_cast %27 : vector<64x256xf32> to vector<8x8x256xf32>
    %29 = vector.extract_strided_slice %28 {offsets = [0, 0, 0], sizes = [8, 8, 128], strides = [1, 1, 1]} : vector<8x8x256xf32> to vector<8x8x128xf32>
    %30 = vector.shape_cast %13 : vector<1x128xf32> to vector<1x1x128xf32>
    %31 = vector.broadcast %30 : vector<1x1x128xf32> to vector<8x8x128xf32>
    %32 = arith.addf %29, %31 : vector<8x8x128xf32>
    %33 = vector.extract_strided_slice %28 {offsets = [0, 0, 128], sizes = [8, 8, 128], strides = [1, 1, 1]} : vector<8x8x256xf32> to vector<8x8x128xf32>
    %34 = vector.shape_cast %14 : vector<1x128xf32> to vector<1x1x128xf32>
    %35 = vector.broadcast %34 : vector<1x1x128xf32> to vector<8x8x128xf32>
    %36 = arith.addf %33, %35 : vector<8x8x128xf32>
    %37 = vector.shape_cast %26 : vector<8x128xf32> to vector<8x1x128xf32>
    %38 = vector.broadcast %37 : vector<8x1x128xf32> to vector<8x8x128xf32>
    %39 = arith.mulf %38, %32 : vector<8x8x128xf32>
    %40 = vector.shape_cast %39 : vector<8x8x128xf32> to vector<64x128xf32>
    %41 = arith.truncf %40 : vector<64x128xf32> to vector<64x128xbf16>
    %cst_20 = arith.constant dense<0.000000e+00> : vector<64x128xf32>
    %42 = tpu.matmul %41, %4, %cst_20 {dimension_numbers = #tpu.dot_dimension_numbers<[1], [0], [0], [1], [0, 0, 1, 1], [], []>} : vector<64x128xbf16>, vector<128x128xbf16>, vector<64x128xf32> -> vector<64x128xf32>
    %43 = vector.shape_cast %42 : vector<64x128xf32> to vector<8x8x128xf32>
    %cst_21 = arith.constant dense<0xFF800000> : vector<8x128xf32>
    %44 = vector.multi_reduction <maximumf>, %43, %cst_21 [1] : vector<8x8x128xf32> to vector<8x128xf32>
    %45 = vector.shape_cast %44 : vector<8x128xf32> to vector<8x1x128xf32>
    %46 = vector.broadcast %45 : vector<8x1x128xf32> to vector<8x8x128xf32>
    %47 = arith.subf %43, %46 : vector<8x8x128xf32>
    %48 = math.exp %47 : vector<8x8x128xf32>
    %49 = arith.mulf %48, %36 : vector<8x8x128xf32>
    %cst_22 = arith.constant dense<0.000000e+00> : vector<8x128xf32>
    %50 = vector.multi_reduction <add>, %49, %cst_22 [1] : vector<8x8x128xf32> to vector<8x128xf32>
    %cst_23 = arith.constant dense<0.000000e+00> : vector<8x128xf32>
    %51 = vector.multi_reduction <add>, %48, %cst_23 [1] : vector<8x8x128xf32> to vector<8x128xf32>
    %52 = tpu.reciprocal %51 {approx = true} : vector<8x128xf32> -> vector<8x128xf32>
    %53 = arith.mulf %50, %52 : vector<8x128xf32>
    %54 = arith.truncf %53 : vector<8x128xf32> to vector<8x128xbf16>
    %cst_24 = arith.constant dense<0.000000e+00> : vector<8x128xf32>
    %55 = tpu.matmul %54, %5, %cst_24 {dimension_numbers = #tpu.dot_dimension_numbers<[1], [0], [0], [1], [0, 0, 1, 1], [], []>} : vector<8x128xbf16>, vector<128x128xbf16>, vector<8x128xf32> -> vector<8x128xf32>
    %56 = vector.broadcast %15 : vector<1x128xf32> to vector<8x128xf32>
    %57 = arith.addf %55, %56 : vector<8x128xf32>
    %58 = arith.truncf %57 : vector<8x128xf32> to vector<8x128xbf16>
    %cst_25 = arith.constant dense<0.000000e+00> : vector<8x128xf32>
    %59 = tpu.matmul %58, %6, %cst_25 {dimension_numbers = #tpu.dot_dimension_numbers<[1], [0], [0], [1], [0, 0, 1, 1], [], []>} : vector<8x128xbf16>, vector<128x128xbf16>, vector<8x128xf32> -> vector<8x128xf32>
    %60 = vector.broadcast %16 : vector<1x128xf32> to vector<8x128xf32>
    %61 = arith.addf %59, %60 : vector<8x128xf32>
    %cst_26 = arith.constant 0.000000e+00 : f32
    %62 = vector.broadcast %cst_26 : f32 to vector<8x128xf32>
    %63 = arith.maximumf %61, %62 : vector<8x128xf32>
    %64 = arith.addf %63, %57 : vector<8x128xf32>
    %65 = arith.truncf %64 : vector<8x128xf32> to vector<8x128xbf16>
    %cst_27 = arith.constant dense<0.000000e+00> : vector<8x128xf32>
    %66 = tpu.matmul %65, %7, %cst_27 {dimension_numbers = #tpu.dot_dimension_numbers<[1], [0], [0], [1], [0, 0, 1, 1], [], []>} : vector<8x128xbf16>, vector<128x128xbf16>, vector<8x128xf32> -> vector<8x128xf32>
    %67 = vector.broadcast %17 : vector<1x128xf32> to vector<8x128xf32>
    %68 = arith.addf %66, %67 : vector<8x128xf32>
    %cst_28 = arith.constant 0.000000e+00 : f32
    %69 = vector.broadcast %cst_28 : f32 to vector<8x128xf32>
    %70 = arith.maximumf %68, %69 : vector<8x128xf32>
    %71 = arith.truncf %70 : vector<8x128xf32> to vector<8x128xbf16>
    %cst_29 = arith.constant dense<0.000000e+00> : vector<8x1024xf32>
    %72 = tpu.matmul %71, %9, %cst_29 {dimension_numbers = #tpu.dot_dimension_numbers<[1], [0], [0], [1], [0, 0, 1, 1], [], []>} : vector<8x128xbf16>, vector<128x1024xbf16>, vector<8x1024xf32> -> vector<8x1024xf32>
    %73 = vector.broadcast %10 : vector<1x1024xf32> to vector<8x1024xf32>
    %74 = arith.addf %72, %73 : vector<8x1024xf32>
    %cst_30 = arith.constant 0.000000e+00 : f32
    %75 = vector.broadcast %cst_30 : f32 to vector<8x1024xf32>
    %76 = arith.maximumf %74, %75 : vector<8x1024xf32>
    %77 = arith.truncf %76 : vector<8x1024xf32> to vector<8x1024xbf16>
    %cst_31 = arith.constant dense<0.000000e+00> : vector<8x128xf32>
    %78 = tpu.matmul %77, %8, %cst_31 {dimension_numbers = #tpu.dot_dimension_numbers<[1], [0], [0], [1], [0, 0, 1, 1], [], []>} : vector<8x1024xbf16>, vector<1024x128xbf16>, vector<8x128xf32> -> vector<8x128xf32>
    %79 = vector.broadcast %18 : vector<1x128xf32> to vector<8x128xf32>
    %80 = arith.addf %78, %79 : vector<8x128xf32>
    %c0_32 = arith.constant 0 : index
    %c0_33 = arith.constant 0 : index
    %81 = vector.load %arg8[%c0_32, %c0_33] : memref<8x128xf32, #tpu.memory_space<vmem>>, vector<8x128xf32>
    tpu.vector_store %arg8[%c0_32, %c0_33], %80 {strides = array<i32>} : memref<8x128xf32, #tpu.memory_space<vmem>>, vector<8x128xf32>,
    %82 = tpu.iota {dimensions = array<i32: 1>} : vector<1x128xi32>
    %83 = tpu.iota {dimensions = array<i32: 0>} : vector<8x128xi32>
    %cst_34 = arith.constant 0.000000e+00 : f32
    %84 = vector.broadcast %cst_34 : f32 to vector<8x128xf32>
    %c0_35 = arith.constant 0 : index
    %85 = memref.load %arg2[%c0_35] : memref<8xi32, #tpu.memory_space<smem>>
    %86 = vector.broadcast %85 : i32 to vector<1x128xi32>
    %87 = arith.cmpi eq, %82, %86 : vector<1x128xi32>
    %c1 = arith.constant 1 : index
    %88 = memref.load %arg2[%c1] : memref<8xi32, #tpu.memory_space<smem>>
    %c3_i32 = arith.constant 3 : i32
    %89 = arith.addi %c3_i32, %88 : i32
    %90 = vector.broadcast %89 : i32 to vector<1x128xi32>
    %91 = arith.cmpi eq, %82, %90 : vector<1x128xi32>
    %92 = arith.ori %87, %91 : vector<1x128xi1>
    %c2 = arith.constant 2 : index
    %93 = memref.load %arg2[%c2] : memref<8xi32, #tpu.memory_space<smem>>
    %c6_i32 = arith.constant 6 : i32
    %94 = arith.addi %c6_i32, %93 : i32
    %95 = vector.broadcast %94 : i32 to vector<1x128xi32>
    %96 = arith.cmpi eq, %82, %95 : vector<1x128xi32>
    %97 = arith.ori %92, %96 : vector<1x128xi1>
    %c3 = arith.constant 3 : index
    %98 = memref.load %arg2[%c3] : memref<8xi32, #tpu.memory_space<smem>>
    %c9_i32 = arith.constant 9 : i32
    %99 = arith.addi %c9_i32, %98 : i32
    %100 = vector.broadcast %99 : i32 to vector<1x128xi32>
    %101 = arith.cmpi eq, %82, %100 : vector<1x128xi32>
    %102 = arith.ori %97, %101 : vector<1x128xi1>
    %c0_i32 = arith.constant 0 : i32
    %103 = vector.broadcast %c0_i32 : i32 to vector<8x128xi32>
    %104 = arith.cmpi eq, %83, %103 : vector<8x128xi32>
    %105 = arith.extui %102 : vector<1x128xi1> to vector<1x128xi32>
    %106 = arith.sitofp %105 : vector<1x128xi32> to vector<1x128xf32>
    %cst_36 = arith.constant 0.000000e+00 : f32
    %107 = vector.shape_cast %106 : vector<1x128xf32> to vector<1x128xf32>
    %108 = vector.broadcast %107 : vector<1x128xf32> to vector<8x128xf32>
    %109 = vector.broadcast %cst_36 : f32 to vector<8x128xf32>
    %110 = arith.select %104, %108, %109 : vector<8x128xi1>, vector<8x128xf32>
    %111 = arith.addf %84, %110 : vector<8x128xf32>
    %c4 = arith.constant 4 : index
    %112 = memref.load %arg2[%c4] : memref<8xi32, #tpu.memory_space<smem>>
    %113 = vector.broadcast %112 : i32 to vector<1x128xi32>
    %114 = arith.cmpi eq, %82, %113 : vector<1x128xi32>
    %c5 = arith.constant 5 : index
    %115 = memref.load %arg2[%c5] : memref<8xi32, #tpu.memory_space<smem>>
    %c3_i32_37 = arith.constant 3 : i32
    %116 = arith.addi %c3_i32_37, %115 : i32
    %117 = vector.broadcast %116 : i32 to vector<1x128xi32>
    %118 = arith.cmpi eq, %82, %117 : vector<1x128xi32>
    %119 = arith.ori %114, %118 : vector<1x128xi1>
    %c6 = arith.constant 6 : index
    %120 = memref.load %arg2[%c6] : memref<8xi32, #tpu.memory_space<smem>>
    %c6_i32_38 = arith.constant 6 : i32
    %121 = arith.addi %c6_i32_38, %120 : i32
    %122 = vector.broadcast %121 : i32 to vector<1x128xi32>
    %123 = arith.cmpi eq, %82, %122 : vector<1x128xi32>
    %124 = arith.ori %119, %123 : vector<1x128xi1>
    %c7 = arith.constant 7 : index
    %125 = memref.load %arg2[%c7] : memref<8xi32, #tpu.memory_space<smem>>
    %c9_i32_39 = arith.constant 9 : i32
    %126 = arith.addi %c9_i32_39, %125 : i32
    %127 = vector.broadcast %126 : i32 to vector<1x128xi32>
    %128 = arith.cmpi eq, %82, %127 : vector<1x128xi32>
    %129 = arith.ori %124, %128 : vector<1x128xi1>
    %c1_i32 = arith.constant 1 : i32
    %130 = vector.broadcast %c1_i32 : i32 to vector<8x128xi32>
    %131 = arith.cmpi eq, %83, %130 : vector<8x128xi32>
    %132 = arith.extui %129 : vector<1x128xi1> to vector<1x128xi32>
    %133 = arith.sitofp %132 : vector<1x128xi32> to vector<1x128xf32>
    %cst_40 = arith.constant 0.000000e+00 : f32
    %134 = vector.shape_cast %133 : vector<1x128xf32> to vector<1x128xf32>
    %135 = vector.broadcast %134 : vector<1x128xf32> to vector<8x128xf32>
    %136 = vector.broadcast %cst_40 : f32 to vector<8x128xf32>
    %137 = arith.select %131, %135, %136 : vector<8x128xi1>, vector<8x128xf32>
    %138 = arith.addf %111, %137 : vector<8x128xf32>
    %139 = vector.broadcast %19 : vector<1x128xf32> to vector<8x128xf32>
    %140 = arith.addf %80, %139 : vector<8x128xf32>
    %141 = arith.mulf %140, %138 : vector<8x128xf32>
    %cst_41 = arith.constant dense<0.000000e+00> : vector<8xf32>
    %142 = vector.multi_reduction <add>, %141, %cst_41 [1] : vector<8x128xf32> to vector<8xf32>
    %143 = vector.shape_cast %142 : vector<8xf32> to vector<8x1xf32>
    %144 = vector.extract_strided_slice %138 {offsets = [0, 0], sizes = [8, 3], strides = [1, 1]} : vector<8x128xf32> to vector<8x3xf32>
    %145 = vector.extract_strided_slice %138 {offsets = [0, 3], sizes = [8, 3], strides = [1, 1]} : vector<8x128xf32> to vector<8x3xf32>
    %cst_42 = arith.constant dense<0.000000e+00> : vector<8x3xf32>
    %146 = tpu.matmul %144, %22, %cst_42 {dimension_numbers = #tpu.dot_dimension_numbers<[1], [0], [0], [1], [0, 0, 1, 1], [], []>} : vector<8x3xf32>, vector<3x3xf32>, vector<8x3xf32> -> vector<8x3xf32>
    %147 = arith.mulf %146, %145 : vector<8x3xf32>
    %cst_43 = arith.constant dense<0.000000e+00> : vector<8xf32>
    %148 = vector.multi_reduction <add>, %147, %cst_43 [1] : vector<8x3xf32> to vector<8xf32>
    %149 = vector.shape_cast %148 : vector<8xf32> to vector<8x1xf32>
    %150 = arith.addf %143, %149 : vector<8x1xf32>
    %151 = vector.extract_strided_slice %138 {offsets = [0, 3], sizes = [8, 3], strides = [1, 1]} : vector<8x128xf32> to vector<8x3xf32>
    %152 = vector.extract_strided_slice %138 {offsets = [0, 6], sizes = [8, 3], strides = [1, 1]} : vector<8x128xf32> to vector<8x3xf32>
    %cst_44 = arith.constant dense<0.000000e+00> : vector<8x3xf32>
    %153 = tpu.matmul %151, %22, %cst_44 {dimension_numbers = #tpu.dot_dimension_numbers<[1], [0], [0], [1], [0, 0, 1, 1], [], []>} : vector<8x3xf32>, vector<3x3xf32>, vector<8x3xf32> -> vector<8x3xf32>
    %154 = arith.mulf %153, %152 : vector<8x3xf32>
    %cst_45 = arith.constant dense<0.000000e+00> : vector<8xf32>
    %155 = vector.multi_reduction <add>, %154, %cst_45 [1] : vector<8x3xf32> to vector<8xf32>
    %156 = vector.shape_cast %155 : vector<8xf32> to vector<8x1xf32>
    %157 = arith.addf %150, %156 : vector<8x1xf32>
    %158 = vector.extract_strided_slice %138 {offsets = [0, 6], sizes = [8, 3], strides = [1, 1]} : vector<8x128xf32> to vector<8x3xf32>
    %159 = vector.extract_strided_slice %138 {offsets = [0, 9], sizes = [8, 3], strides = [1, 1]} : vector<8x128xf32> to vector<8x3xf32>
    %cst_46 = arith.constant dense<0.000000e+00> : vector<8x3xf32>
    %160 = tpu.matmul %158, %22, %cst_46 {dimension_numbers = #tpu.dot_dimension_numbers<[1], [0], [0], [1], [0, 0, 1, 1], [], []>} : vector<8x3xf32>, vector<3x3xf32>, vector<8x3xf32> -> vector<8x3xf32>
    %161 = arith.mulf %160, %159 : vector<8x3xf32>
    %cst_47 = arith.constant dense<0.000000e+00> : vector<8xf32>
    %162 = vector.multi_reduction <add>, %161, %cst_47 [1] : vector<8x3xf32> to vector<8xf32>
    %163 = vector.shape_cast %162 : vector<8xf32> to vector<8x1xf32>
    %164 = arith.addf %157, %163 : vector<8x1xf32>
    %165 = vector.extract_strided_slice %80 {offsets = [0, 0], sizes = [8, 3], strides = [1, 1]} : vector<8x128xf32> to vector<8x3xf32>
    %166 = vector.broadcast %20 : vector<1x3xf32> to vector<8x3xf32>
    %167 = arith.addf %166, %165 : vector<8x3xf32>
    %cst_48 = arith.constant dense<0xFF800000> : vector<8xf32>
    %168 = vector.multi_reduction <maximumf>, %167, %cst_48 [1] : vector<8x3xf32> to vector<8xf32>
    %169 = vector.shape_cast %168 : vector<8xf32> to vector<8x1xf32>
    %170 = vector.broadcast %169 : vector<8x1xf32> to vector<8x3xf32>
    %171 = arith.subf %167, %170 : vector<8x3xf32>
    %172 = math.exp %171 : vector<8x3xf32>
    %cst_49 = arith.constant dense<0.000000e+00> : vector<8x3xf32>
    %173 = tpu.matmul %172, %23, %cst_49 {dimension_numbers = #tpu.dot_dimension_numbers<[1], [0], [0], [1], [0, 0, 1, 1], [], []>} : vector<8x3xf32>, vector<3x3xf32>, vector<8x3xf32> -> vector<8x3xf32>
    %174 = math.log %173 : vector<8x3xf32>
    %175 = vector.broadcast %169 : vector<8x1xf32> to vector<8x3xf32>
    %176 = arith.addf %175, %174 : vector<8x3xf32>
    %177 = vector.extract_strided_slice %80 {offsets = [0, 3], sizes = [8, 3], strides = [1, 1]} : vector<8x128xf32> to vector<8x3xf32>
    %178 = arith.addf %176, %177 : vector<8x3xf32>
    %cst_50 = arith.constant dense<0xFF800000> : vector<8xf32>
    %179 = vector.multi_reduction <maximumf>, %178, %cst_50 [1] : vector<8x3xf32> to vector<8xf32>
    %180 = vector.shape_cast %179 : vector<8xf32> to vector<8x1xf32>
    %181 = vector.broadcast %180 : vector<8x1xf32> to vector<8x3xf32>
    %182 = arith.subf %178, %181 : vector<8x3xf32>
    %183 = math.exp %182 : vector<8x3xf32>
    %cst_51 = arith.constant dense<0.000000e+00> : vector<8x3xf32>
    %184 = tpu.matmul %183, %23, %cst_51 {dimension_numbers = #tpu.dot_dimension_numbers<[1], [0], [0], [1], [0, 0, 1, 1], [], []>} : vector<8x3xf32>, vector<3x3xf32>, vector<8x3xf32> -> vector<8x3xf32>
    %185 = math.log %184 : vector<8x3xf32>
    %186 = vector.broadcast %180 : vector<8x1xf32> to vector<8x3xf32>
    %187 = arith.addf %186, %185 : vector<8x3xf32>
    %188 = vector.extract_strided_slice %80 {offsets = [0, 6], sizes = [8, 3], strides = [1, 1]} : vector<8x128xf32> to vector<8x3xf32>
    %189 = arith.addf %187, %188 : vector<8x3xf32>
    %cst_52 = arith.constant dense<0xFF800000> : vector<8xf32>
    %190 = vector.multi_reduction <maximumf>, %189, %cst_52 [1] : vector<8x3xf32> to vector<8xf32>
    %191 = vector.shape_cast %190 : vector<8xf32> to vector<8x1xf32>
    %192 = vector.broadcast %191 : vector<8x1xf32> to vector<8x3xf32>
    %193 = arith.subf %189, %192 : vector<8x3xf32>
    %194 = math.exp %193 : vector<8x3xf32>
    %cst_53 = arith.constant dense<0.000000e+00> : vector<8x3xf32>
    %195 = tpu.matmul %194, %23, %cst_53 {dimension_numbers = #tpu.dot_dimension_numbers<[1], [0], [0], [1], [0, 0, 1, 1], [], []>} : vector<8x3xf32>, vector<3x3xf32>, vector<8x3xf32> -> vector<8x3xf32>
    %196 = math.log %195 : vector<8x3xf32>
    %197 = vector.broadcast %191 : vector<8x1xf32> to vector<8x3xf32>
    %198 = arith.addf %197, %196 : vector<8x3xf32>
    %199 = vector.extract_strided_slice %80 {offsets = [0, 9], sizes = [8, 3], strides = [1, 1]} : vector<8x128xf32> to vector<8x3xf32>
    %200 = arith.addf %198, %199 : vector<8x3xf32>
    %201 = vector.broadcast %21 : vector<1x3xf32> to vector<8x3xf32>
    %202 = arith.addf %200, %201 : vector<8x3xf32>
    %cst_54 = arith.constant dense<0xFF800000> : vector<8xf32>
    %203 = vector.multi_reduction <maximumf>, %202, %cst_54 [1] : vector<8x3xf32> to vector<8xf32>
    %204 = vector.shape_cast %203 : vector<8xf32> to vector<8x1xf32>
    %205 = vector.broadcast %204 : vector<8x1xf32> to vector<8x3xf32>
    %206 = arith.subf %202, %205 : vector<8x3xf32>
    %207 = math.exp %206 : vector<8x3xf32>
    %cst_55 = arith.constant dense<0.000000e+00> : vector<8xf32>
    %208 = vector.multi_reduction <add>, %207, %cst_55 [1] : vector<8x3xf32> to vector<8xf32>
    %209 = vector.shape_cast %208 : vector<8xf32> to vector<8x1xf32>
    %210 = math.log %209 : vector<8x1xf32>
    %211 = arith.addf %204, %210 : vector<8x1xf32>
    %212 = tpu.iota {dimensions = array<i32: 0>} : vector<8x1xi32>
    %c2_i32 = arith.constant 2 : i32
    %213 = vector.broadcast %c2_i32 : i32 to vector<8x1xi32>
    %214 = arith.cmpi slt, %212, %213 : vector<8x1xi32>
    %215 = arith.extui %214 : vector<8x1xi1> to vector<8x1xi32>
    %216 = arith.sitofp %215 : vector<8x1xi32> to vector<8x1xf32>
    %217 = arith.subf %164, %211 : vector<8x1xf32>
    %218 = arith.mulf %217, %216 : vector<8x1xf32>
    %219 = vector.shape_cast %218 : vector<8x1xf32> to vector<1x8x1xf32>
    %cst_56 = arith.constant dense<0.000000e+00> : vector<1xf32>
    %220 = vector.multi_reduction <add>, %219, %cst_56 [1, 2] : vector<1x8x1xf32> to vector<1xf32>
    %221 = vector.shape_cast %220 : vector<1xf32> to vector<1x1x1xf32>
    %222 = vector.extract %221[0, 0, 0] : f32 from vector<1x1x1xf32>
    %cst_57 = arith.constant 0.000000e+00 : f32
    %223 = arith.subf %cst_57, %222 : f32
    %c0_58 = arith.constant 0 : index
    %c0_59 = arith.constant 0 : index
    %224 = memref.load %arg9[%c0_58, %c0_59] : memref<1x1xf32, #tpu.memory_space<smem>>
    memref.store %223, %arg9[%c0_58, %c0_59] : memref<1x1xf32, #tpu.memory_space<smem>>
    return
  }
}

</mosaic_0001>

<bundles_post_ra>
// kernel: score_pred_forward.1
= control target key start
LH: loop header
LB: loop body
LE: loop exit
PB: predicated region body
PF: predicated region fallthrough
CT: control target
= control target key end

     0   :  { %15 = vsyncpa [#allocation5], 0  ;;  %s4200_s0 = inlined_call_operand.vmem [shape: bf16[64,32], index: 0, kind: input, shape index: {}]   ;;  %s4201_s1 = inlined_call_operand.vmem [shape: bf16[8,32], index: 1, kind: input, shape index: {}]   ;;  %s4202_s2 = inlined_call_operand.vmem [shape: s32[8], index: 2, kind: input, shape index: {}]   ;;  %s4203_s3 = inlined_call_operand.vmem [shape: bf16[32,384], index: 3, kind: input, shape index: {}]   ;;  %s4204_s4 = inlined_call_operand.hbm [shape: bf16[1536,128], index: 4, kind: input, shape index: {}]   ;;  %s4205_s5 = inlined_call_operand.hbm [shape: bf16[128,1024], index: 5, kind: input, shape index: {}]   ;;  %s4206_s6 = inlined_call_operand.vmem [shape: f32[1,1024], index: 6, kind: input, shape index: {}]   ;;  %s4207_s7 = inlined_call_operand.vmem [shape: f32[16,128], index: 7, kind: input, shape index: {}]   ;;  %s4208_s8 = inlined_call_operand.vmem [shape: f32[8,128], index: 8, kind: output, shape index: {0}]   ;;  %s4209_s9 = inlined_call_operand.hbm [shape: f32[1,1], index: 9, kind: output, shape index: {1}]  }
   0x1   :  { %16 = vsyncpa [#allocation3], 0 }
   0x2   :  { %17 = vsyncpa [#allocation8], 0 }
   0x3   :  { %18 = vsyncpa [#allocation4], 0  ;;  %s29_s11 = sshll.u32 %s4202_s2, 4  ;;  %s30_s11 = int_to_ptr.vmem [resolvable:$true] %s29_s11 }
   0x4   :  { %s3641_s12 = scalar_lea.vmem %s30_s11, 16  ;;  %p3646_p1 = scmp.lt.s32.totalorder %s30_s11, %s30_s11 }
   0x5   :  { %p3642_p0 = scmp.ne.s32.totalorder %s30_s11, %s3641_s12  ;;  %p3647_p2 = scmp.lt.s32.totalorder %s3641_s12, %s3641_s12 }
   0x7   :  { %p3648_p3 = por %p3647_p2, %p3646_p1 }
   0x9   :  { %p3649_p4 = pnand %p3648_p3, %p3642_p0 }
   0xb   :  { %3652 = shalt.err (!%p3649_p4)
}
   0xc   :  { %s3715_s13 = smov [#allocation2]   ;;  %s3716_s14 = smov [#allocation6]  }
   0xd   :  { %32 = dma.vmem_to_smem %s30_s11, 16, %s3715_s13, [#allocation5]  }
   0xe   :  { %s40_s15 = sshll.u32 %s3716_s14, 4  ;;  %s3653_s18 = scalar_lea.hbm %s4204_s4, 12288  ;;  %s41_s15 = int_to_ptr.vmem [resolvable:$true] %s40_s15 }
   0xf   :  { %p3654_p5 = scmp.ne.s32.totalorder %s4204_s4, %s3653_s18  ;;  %p3657_p6 = scmp.lt.u32.totalorder %s3653_s18, %s4204_s4 }
  0x11   :  { %p3659_p7 = pnand %p3657_p6, %p3654_p5 }
  0x13   :  { %3662 = shalt.err (!%p3659_p7)
}
  0x14   :  { %s3663_s22 = scalar_lea.vmem %s41_s15, 12288  ;;  %p3668_p9 = scmp.lt.s32.totalorder %s41_s15, %s41_s15 }
  0x15   :  { %p3664_p8 = scmp.ne.s32.totalorder %s41_s15, %s3663_s22  ;;  %p3669_p10 = scmp.lt.s32.totalorder %s3663_s22, %s3663_s22 }
  0x17   :  { %p3670_p11 = por %p3669_p10, %p3668_p9 }
  0x19   :  { %p3671_p12 = pnand %p3670_p11, %p3664_p8 }
  0x1b   :  { %3674 = shalt.err (!%p3671_p12)
}
  0x1c   :  { %s3717_s23 = smov 64   ;;  %s3718_s24 = smov 4  }
  0x1d   :  { %46 = dma.hbm_to_vmem [thread:$0]  %s4204_s4, 12288, %s41_s15, [#allocation3], %s3717_s23, %s3717_s23, %s3718_s24  }
  0x1e   :  { %s3719_s27 = smov [#allocation7]   ;;  %s3675_s10 = scalar_lea.hbm %s4205_s5, 8192 }
  0x1f   :  { %s52_s28 = sshll.u32 %s3719_s27, 4  ;;  %p3676_p13 = scmp.ne.s32.totalorder %s4205_s5, %s3675_s10  ;;  %s53_s28 = int_to_ptr.vmem [resolvable:$true] %s52_s28 }
  0x20   :  { %p3679_p0 = scmp.lt.u32.totalorder %s3675_s10, %s4205_s5 }
  0x22   :  { %p3681_p1 = pnand %p3679_p0, %p3676_p13 }
  0x24   :  { %3684 = shalt.err (!%p3681_p1)
}
  0x25   :  { %s3685_s16 = scalar_lea.vmem %s53_s28, 8192  ;;  %p3690_p3 = scmp.lt.s32.totalorder %s53_s28, %s53_s28 }
  0x26   :  { %p3686_p2 = scmp.ne.s32.totalorder %s53_s28, %s3685_s16  ;;  %p3691_p4 = scmp.lt.s32.totalorder %s3685_s16, %s3685_s16 }
  0x28   :  { %p3692_p5 = por %p3691_p4, %p3690_p3 }
  0x2a   :  { %p3693_p6 = pnand %p3692_p5, %p3686_p2 }
  0x2c   :  { %3696 = shalt.err (!%p3693_p6)
}
  0x2d   :  { %s3720_s4 = smov 512   ;;  %s3721_s15 = smov 32  }
  0x2e   :  { %58 = dma.hbm_to_vmem [thread:$0]  %s4205_s5, 8192, %s53_s28, [#allocation8], %s3720_s4, %s3720_s4, %s3721_s15  }
  0x2f   :  { %3707 = dma.done.wait [#allocation5], 16  }
  0x30   :  { %3708 = vsyncadd [#allocation5], 4294967280 }
  0x31   :  { %3709 = dma.done.wait [#allocation3], 12288  }
  0x32   :  { %3710 = vsyncadd [#allocation3], 4294955008 }
  0x33   :  { %3711 = dma.done.wait [#allocation8], 8192  }
  0x34   :  { %3712 = vsyncadd [#allocation8], 4294959104 }
  0x35   :  { %72 = sfence }
  0x36   :  { %v3722_v0 = vmov 0.0   ;;  %v3484_v1 = vld [vmem:[%s4203_s3] ss:$12 sps:$4 sm:$0xff]   ;;  %v3485_v2 = vld [vmem:[%s4203_s3 + $0x8] ss:$12 sps:$4 sm:$0xff]   ;;  %vm3723_vm0 = vmmov 0   ;;  %v350_v21 = vlaneseq }
  0x37   :  { %3345 = vmatprep.subr.bf16.mxu0 %v3722_v0  ;;  %v3487_v3 = vld [vmem:[%s4203_s3 + $0x4] ss:$12 sps:$4 sm:$0xff]   ;;  %3349 = vmatprep.mubr.msk.bf16.mxu0 %vm3723_vm0, %v3722_v0  ;;  %v3489_v5 = vld [vmem:[%s4203_s3 + $0x20] ss:$12 sps:$4 sm:$0xff]   ;;  %v3491_v6 = vld [vmem:[%s4203_s3 + $0x1c] ss:$12 sps:$4 sm:$0xff]  }
  0x38   :  { %3346 = vmatpush3.bf16.msra.mxu0 %v3484_v1  ;;  %462 = vmatprep.subr.bf16.mxu1 %v3485_v2  ;;  %v3488_v4 = vld [vmem:[%s4203_s3 + $0x18] ss:$12 sps:$4 sm:$0xff]   ;;  %v3724_v7 = vmov 0   ;;  %v82_v8 = vld [vmem:[%s4201_s1] sm:$0xf]  ;;  %vm366_vm1 = vcmask 261120  }
  0x39   :  { %463 = vmatpush1.bf16.msra.mxu1 %v3487_v3  ;;  %3347 = vmatprep.subr.bf16.mxu0 %v3722_v0  ;;  %v3492_v9 = vld [vmem:[%s4200_s0] sm:$0xff]   ;;  %v3497_v11 = vld [vmem:[#allocation6 + $0x8] sm:$0xff]   ;;  %v3498_v13 = vld [vmem:[#allocation6 + $0x10] sm:$0xff]   ;;  %v3858_v22 = vshrl.u32 %v350_v21, 7  ;;  %v3725_v23 = vmov 1966171168  }
  0x3a   :  { %494 = vmatprep.mubr.bf16.mxu1 %v3724_v7  ;;  %464 = vmatprep.subr.bf16.mxu1 %v3489_v5  ;;  %v3496_v10 = vld [vmem:[#allocation6] sm:$0xff]   ;;  %v3493_v12 = vld [vmem:[%s4200_s0 + $0x8] sm:$0xff]   ;;  %v3499_v14 = vld [vmem:[#allocation6 + $0x18] sm:$0xff]   ;;  %v562_v24 = vunpack.c.l.s4 %v3725_v23  ;;  %vm994_vm2 = vcmask 1041409   ;;  %vm996_vm3 = vcmask 1042434   ;;  %vm998_vm4 = vcmask 1043459  }
  0x3b   :  { %v3494_v15 = vld [vmem:[%s4200_s0 + $0x10] sm:$0xff]   ;;  %v3495_v16 = vld [vmem:[%s4200_s0 + $0x18] sm:$0xff]   ;;  %v3500_v17 = vld [vmem:[#allocation6 + $0x20] sm:$0xff]   ;;  %v3861_v25 = vsub.s32 0, %v3858_v22  ;;  %v3872_v30 = vsub.s32 1, %v3858_v22  ;;  %vm1000_vm5 = vcmask 1044484  }
  0x3c   :  { %3348 = vmatpush3.bf16.msra.mxu0 %v3488_v4  ;;  %v3501_v18 = vld [vmem:[#allocation6 + $0x28] sm:$0xff]   ;;  %v3502_v19 = vld [vmem:[#allocation6 + $0x30] sm:$0xff]   ;;  %v3503_v20 = vld [vmem:[#allocation6 + $0x38] sm:$0xff]   ;;  %v563_v27 = vunpack.c.0.s8 %v562_v24  ;;  %vm1002_vm6 = vcmask 1045509   ;;  %vm1004_vm7 = vcmask 1046534   ;;  %vm1006_vm8 = vcmask 1047559  }
  0x3d   :  { %465 = vmatpush1.bf16.msra.mxu1 %v3491_v6  ;;  %3353 = vmatprep.subr.bf16.mxu0 %v3496_v10  ;;  %v3866_v26 = vld [vmem:[%s4207_s7] sm:$0xff]  ;;  %s4019_s20 = sld [smem:[#allocation2 + $0x5]]  ;;  %s4021_s2 = sld [smem:[#allocation2]] }
  0x3e   :  { %3377 = vmatprep.subr.bf16.mxu1 %v3722_v0  ;;  %v353_v28 = vrot.slane %v3866_v26, %v3861_v25  ;;  %v566_v29 = vsub.s32 %v563_v27, %v3858_v22  ;;  %v538_v39 = vrot.slane %v3866_v26, %v3872_v30  ;;  %s4023_s21 = sld [smem:[#allocation2 + $0x2]]  ;;  %s4025_s22 = sld [smem:[#allocation2 + $0x4]] }
  0x3f   :  { %3350 = vmatmul.mubr.msk.bf16.vlgmr.msra.gmra.mrb[0].mxu0 %vm366_vm1, %v82_v8  ;;  %s4027_s5 = sld [smem:[#allocation2 + $0x6]]  ;;  %s4029_s23 = sld [smem:[#allocation2 + $0x3]] }
  0x40   :  { %3017 = vmatmul.mubr.msk.bf16.vlgmr.msra.gmra.mrb[0].mxu1 %vm366_vm1, %v3492_v9  ;;  %3354 = vmatpush3.bf16.msra.mxu0 %v3496_v10  ;;  %s4031_s24 = sld [smem:[#allocation2 + $0x7]]  ;;  %s3726_s3 = smov 125  }
  0x41   :  { %504 = vmatprep.mubr.bf16.mxu1 %v3724_v7  ;;  %3355 = vmatprep.subr.bf16.mxu0 %v3497_v11  ;;  %s3727_s12 = smov 122   ;;  %s3697_s4 = scalar_lea.hbm %s4209_s9, 16 }
  0x42   :  { %p3698_p7 = scmp.ne.s32.totalorder %s4209_s9, %s3697_s4  ;;  %p3701_p8 = scmp.lt.u32.totalorder %s3697_s4, %s4209_s9 }
  0x43   :  { %s2409_s26 = sadd.s32 3, %s4019_s20 }
  0x44   :  { %3356 = vmatpush3.bf16.msra.mxu0 %v3497_v11  ;;  %s2391_s27 = sadd.s32 6, %s4023_s21  ;;  %p3703_p9 = pnand %p3701_p8, %p3698_p7 }
  0x45   :  { %3357 = vmatprep.subr.bf16.mxu0 %v3498_v13  ;;  %s2414_s28 = sadd.s32 6, %s4027_s5  ;;  %s2396_s29 = sadd.s32 9, %s4029_s23 }
  0x46   :  { %s2419_s30 = sadd.s32 9, %s4031_s24 }
  0x48   :  { %3018 = vmatmul.mubr.msk.bf16.gmra.mrb[4].mxu1 %vm366_vm1, %v3493_v12  ;;  %3358 = vmatpush3.bf16.msra.mxu0 %v3498_v13 }
  0x49   :  { %514 = vmatprep.mubr.bf16.mxu1 %v3724_v7  ;;  %3359 = vmatprep.subr.bf16.mxu0 %v3499_v14 }
  0x4c   :  { %3360 = vmatpush3.bf16.msra.mxu0 %v3499_v14 }
  0x4d   :  { %3361 = vmatprep.subr.bf16.mxu0 %v3500_v17 }
  0x50   :  { %3019 = vmatmul.mubr.msk.bf16.gmra.mrb[8].mxu1 %vm366_vm1, %v3494_v15  ;;  %3362 = vmatpush3.bf16.msra.mxu0 %v3500_v17 }
  0x51   :  { %524 = vmatprep.mubr.bf16.mxu1 %v3724_v7  ;;  %3363 = vmatprep.subr.bf16.mxu0 %v3501_v18 }
  0x54   :  { %3364 = vmatpush3.bf16.msra.mxu0 %v3501_v18 }
  0x55   :  { %3365 = vmatprep.subr.bf16.mxu0 %v3502_v19 }
  0x58   :  { %3020 = vmatmul.mubr.msk.bf16.gmra.mrb[12].mxu1 %vm366_vm1, %v3495_v16  ;;  %3366 = vmatpush3.bf16.msra.mxu0 %v3502_v19 }
  0x59   :  { %3393 = vmatprep.mubr.msk.bf16.mxu1 %vm3723_vm0, %v3722_v0  ;;  %3367 = vmatprep.subr.bf16.mxu0 %v3503_v20 }
  0x5c   :  { %3368 = vmatpush3.bf16.msra.mxu0 %v3503_v20 }
  0x5d   :  { %3397 = vmatprep.subr.bf16.mxu0 %v3722_v0 }
 0x112   :  { %v404_v31 = vpop.f32.mrb[0].mxu0 }
 0x113   :  { %v405_v32 = vadd.f32 %v404_v31, %v353_v28  ;;  %v496_v33 = vpop.f32.mrb[0].mxu1  ;;  %v3351_v34 = vpop.f32.mrb[1].mxu0 }
 0x114   :  { %v3874_v35 = vpop.f32.mrb[1].mxu1  ;;  %v407_v36 = vpop.f32.mrb[2].mxu0  ;;  %v539_v46 = vadd.f32 %v538_v39, %v496_v33 }
 0x115   :  { %v560_v37 = vcombine.high %v405_v32, %v405_v32  ;;  %v567_v38 = vrot.slane %v405_v32, %v566_v29  ;;  %v500_v40 = vpop.f32.mrb[2].mxu1  ;;  %v3352_v41 = vpop.f32.mrb[3].mxu0 }
 0x116   :  { %v3878_v42 = vpop.f32.mrb[3].mxu1  ;;  %v540_v50 = vadd.f32 %v538_v39, %v500_v40  ;;  %v3505_v40 = vld [vmem:[#allocation6 + $0x48] sm:$0xff]   ;;  %v3506_v41 = vld [vmem:[#allocation6 + $0x50] sm:$0xff]  }
 0x117   :  { %v575_v43 = vcombine.high %v567_v38, %v567_v38  ;;  %v583_v44 = vrot.slane %v567_v38, %v566_v29  ;;  %v574_v45 = vrot.slane %v560_v37, %v566_v29  ;;  %v3504_v38 = vld [vmem:[#allocation6 + $0x40] sm:$0xff]  }
 0x118   :  { %3378 = vmatpush3.bf16.msra.mxu1 %v3504_v38 }
 0x119   :  { %v612_v47 = vrot.slane %v583_v44, %v3861_v25  ;;  %v597_v48 = vrot.slane %v575_v43, %v566_v29  ;;  %v605_v49 = vcombine.high %v583_v44, %v583_v44  ;;  %v576_v56 = vcombine.high %v574_v45, %v574_v45  ;;  %3379 = vmatprep.subr.bf16.mxu1 %v3722_v0  ;;  %v3508_v43 = vld [vmem:[#allocation6 + $0x60] sm:$0xff]   ;;  %v3509_v44 = vld [vmem:[#allocation6 + $0x68] sm:$0xff]  }
 0x11a   :  { %v590_v2 = vrot.slane %v574_v45, %v566_v29  ;;  %v3510_v45 = vld [vmem:[#allocation6 + $0x70] sm:$0xff]  }
 0x11b   :  { %v649_v51 = vmul.f32 %v612_v47, %v539_v46  ;;  %v616_v52 = vrot.slane %v597_v48, %v3861_v25  ;;  %v506_v53 = vpop.f32.mrb[4].mxu1  ;;  %v620_v54 = vrot.slane %v605_v49, %v3861_v25  ;;  %v607_v55 = vcombine.high %v597_v48, %v597_v48  ;;  %v3511_v46 = vld [vmem:[#allocation6 + $0x78] sm:$0xff]   ;;  %v3512_v47 = vld [vmem:[#allocation6 + $0x80] sm:$0xff]   ;;  %v3513_v48 = vld [vmem:[#allocation6 + $0x88] sm:$0xff]  }
 0x11c   :  { %v541_v57 = vadd.f32 %v538_v39, %v506_v53  ;;  %v3883_v58 = vpop.f32.mrb[5].mxu1  ;;  %v604_v5 = vrot.slane %v576_v56, %v566_v29  ;;  %v628_v8 = vrot.slane %v590_v2, %v3861_v25  ;;  %v606_v18 = vcombine.high %v590_v2, %v590_v2  ;;  %3380 = vmatpush3.bf16.msra.mxu1 %v3505_v40  ;;  %v3514_v49 = vld [vmem:[#allocation6 + $0x90] sm:$0xff]  }
 0x11d   :  { %v650_v59 = vmul.f32 %v616_v52, %v540_v50  ;;  %v510_v60 = vpop.f32.mrb[6].mxu1  ;;  %v624_v61 = vrot.slane %v607_v55, %v3861_v25  ;;  %3381 = vmatprep.subr.bf16.mxu1 %v3722_v0  ;;  %v3515_v50 = vld [vmem:[#allocation6 + $0x98] sm:$0xff]   ;;  %v3517_v52 = vld [vmem:[#allocation6 + $0xa8] sm:$0xff]   ;;  %v3518_v53 = vld [vmem:[#allocation6 + $0xb0] sm:$0xff]  }
 0x11e   :  { %v651_v62 = vmul.f32 %v620_v54, %v541_v57  ;;  %v542_v63 = vadd.f32 %v538_v39, %v510_v60  ;;  %v3886_v1 = vpop.f32.mrb[7].mxu1  ;;  %v632_v12 = vrot.slane %v604_v5, %v3861_v25  ;;  %v608_v20 = vcombine.high %v604_v5, %v604_v5 }
 0x11f   :  { %v657_v3 = vpack.c.bf16 %v650_v59, %v649_v51  ;;  %v636_v27 = vrot.slane %v606_v18, %v3861_v25  ;;  %v3516_v51 = vld [vmem:[#allocation6 + $0xa0] sm:$0xff]  }
 0x120   :  { %v652_v4 = vmul.f32 %v624_v61, %v542_v63  ;;  %v640_v33 = vrot.slane %v608_v20, %v3861_v25  ;;  %3382 = vmatpush3.bf16.msra.mxu1 %v3506_v41 }
 0x121   :  { %3369 = vmatprep.mubr.bf16.mxu0 %v657_v3  ;;  %3383 = vmatprep.subr.bf16.mxu1 %v3722_v0 }
 0x122   :  { %v658_v6 = vpack.c.bf16 %v652_v4, %v651_v62 }
 0x123   :  { %v516_v9 = vpop.f32.mrb[8].mxu1 }
 0x124   :  { %v543_v10 = vadd.f32 %v538_v39, %v516_v9  ;;  %v3889_v11 = vpop.f32.mrb[9].mxu1  ;;  %3370 = vmatmul.mubr.bf16.vlgmr.msra.gmra.mrb[4].mxu0 %v658_v6 }
 0x125   :  { %v520_v13 = vpop.f32.mrb[10].mxu1  ;;  %3398 = vmatpush3.bf16.msra.mxu0 %v3512_v47 }
 0x126   :  { %v653_v14 = vmul.f32 %v628_v8, %v543_v10  ;;  %v544_v15 = vadd.f32 %v538_v39, %v520_v13  ;;  %v3892_v16 = vpop.f32.mrb[11].mxu1  ;;  %3399 = vmatprep.subr.bf16.mxu0 %v3722_v0 }
 0x128   :  { %v654_v17 = vmul.f32 %v632_v12, %v544_v15 }
 0x129   :  { %3400 = vmatpush3.bf16.msra.mxu0 %v3513_v48 }
 0x12a   :  { %v659_v19 = vpack.c.bf16 %v654_v17, %v653_v14  ;;  %3401 = vmatprep.subr.bf16.mxu0 %v3722_v0 }
 0x12b   :  { %v526_v23 = vpop.f32.mrb[12].mxu1 }
 0x12c   :  { %v545_v24 = vadd.f32 %v538_v39, %v526_v23  ;;  %v3895_v28 = vpop.f32.mrb[13].mxu1  ;;  %3373 = vmatprep.mubr.bf16.mxu0 %v659_v19 }
 0x12d   :  { %v530_v29 = vpop.f32.mrb[14].mxu1  ;;  %3402 = vmatpush3.bf16.msra.mxu0 %v3514_v49 }
 0x12e   :  { %v655_v31 = vmul.f32 %v636_v27, %v545_v24  ;;  %v546_v32 = vadd.f32 %v538_v39, %v530_v29  ;;  %v3898_v34 = vpop.f32.mrb[15].mxu1  ;;  %v3507_v39 = vld [vmem:[#allocation6 + $0x58] sm:$0xff]   ;;  %3403 = vmatprep.subr.bf16.mxu0 %v3722_v0 }
 0x12f   :  { %3384 = vmatpush3.bf16.msra.mxu1 %v3507_v39 }
 0x130   :  { %v656_v36 = vmul.f32 %v640_v33, %v546_v32  ;;  %3385 = vmatprep.subr.bf16.mxu1 %v3722_v0 }
 0x131   :  { %3404 = vmatpush3.bf16.msra.mxu0 %v3515_v50 }
 0x132   :  { %v660_v37 = vpack.c.bf16 %v656_v36, %v655_v31  ;;  %3405 = vmatprep.subr.bf16.mxu0 %v3722_v0 }
 0x133   :  { %3386 = vmatpush3.bf16.msra.mxu1 %v3508_v43 }
 0x134   :  { %3374 = vmatmul.mubr.bf16.gmra.mrb[8].mxu0 %v660_v37  ;;  %3387 = vmatprep.subr.bf16.mxu1 %v3722_v0 }
 0x135   :  { %3413 = vmatprep.mubr.msk.bf16.mxu0 %vm3723_vm0, %v3722_v0  ;;  %3406 = vmatpush3.bf16.msra.mxu0 %v3516_v51 }
 0x136   :  { %3407 = vmatprep.subr.bf16.mxu0 %v3722_v0 }
 0x137   :  { %3388 = vmatpush3.bf16.msra.mxu1 %v3509_v44 }
 0x138   :  { %3389 = vmatprep.subr.bf16.mxu1 %v3722_v0 }
 0x139   :  { %3408 = vmatpush3.bf16.msra.mxu0 %v3517_v52 }
 0x13a   :  { %3409 = vmatprep.subr.bf16.mxu0 %v3722_v0 }
 0x13b   :  { %3390 = vmatpush3.bf16.msra.mxu1 %v3510_v45 }
 0x13c   :  { %3391 = vmatprep.subr.bf16.mxu1 %v3722_v0 }
 0x13d   :  { %3410 = vmatpush3.bf16.msra.mxu0 %v3518_v53 }
 0x13e   :  { %3411 = vmatprep.subr.bf16.mxu0 %v3722_v0 }
 0x13f   :  { %3392 = vmatpush3.bf16.msra.mxu1 %v3511_v46  ;;  %v549_v46 = vsub.s32 2, %v3858_v22 }
 0x140   :  { %3417 = vmatprep.subr.bf16.mxu1 %v3722_v0 }
 0x1f7   :  { %v3371_v54 = vpop.f32.mrb[4].mxu0 }
 0x1f8   :  { %v786_v55 = vrot.slane %v3371_v54, 4  ;;  %v743_v56 = vpop.f32.mrb[5].mxu0 }
 0x1f9   :  { %v774_v57 = vrot.slane %v743_v56, 4  ;;  %v3372_v59 = vpop.f32.mrb[6].mxu0 }
 0x1fa   :  { %v787_v60 = vmax.f32 %v3371_v54, %v786_v55  ;;  %v792_v61 = vrot.slane %v3372_v59, 4  ;;  %v746_v62 = vpop.f32.mrb[7].mxu0 }
 0x1fb   :  { %v775_v63 = vmax.f32 %v743_v56, %v774_v57  ;;  %v780_v2 = vrot.slane %v746_v62, 4 }
 0x1fc   :  { %v788_v3 = vrot.slane %v787_v60, 2  ;;  %v793_v4 = vmax.f32 %v3372_v59, %v792_v61 }
 0x1fd   :  { %v776_v5 = vrot.slane %v775_v63, 2  ;;  %v781_v6 = vmax.f32 %v746_v62, %v780_v2 }
 0x1fe   :  { %v789_v8 = vmax.f32 %v787_v60, %v788_v3  ;;  %v794_v9 = vrot.slane %v793_v4, 2 }
 0x1ff   :  { %v777_v10 = vmax.f32 %v775_v63, %v776_v5  ;;  %v782_v12 = vrot.slane %v781_v6, 2 }
 0x200   :  { %v790_v13 = vrot.slane %v789_v8, 1  ;;  %v795_v14 = vmax.f32 %v793_v4, %v794_v9 }
 0x201   :  { %v778_v15 = vrot.slane %v777_v10, 1  ;;  %v783_v17 = vmax.f32 %v781_v6, %v782_v12 }
 0x202   :  { %v791_v18 = vmax.f32 %v789_v8, %v790_v13  ;;  %v796_v19 = vrot.slane %v795_v14, 1 }
 0x203   :  { %v779_v20 = vmax.f32 %v777_v10, %v778_v15  ;;  %v784_v23 = vrot.slane %v783_v17, 1 }
 0x204   :  { %v824_v24 = vsub.f32 %v3371_v54, %v791_v18  ;;  %v797_v27 = vmax.f32 %v795_v14, %v796_v19 }
 0x205   :  { %v822_v29 = vsub.f32 %v743_v56, %v779_v20  ;;  %v785_v31 = vmax.f32 %v783_v17, %v784_v23  ;;  %v3937_v56 = vrot.slane %v3866_v26, %v549_v46 }
 0x206   :  { %v834_v32 = vmul.f32 1.442695, %v824_v24  ;;  %v825_v33 = vsub.f32 %v3372_v59, %v797_v27 }
 0x207   :  { %v830_v36 = vmul.f32 1.442695, %v822_v29  ;;  %v823_v37 = vsub.f32 %v746_v62, %v785_v31  ;;  %v3917_v38 = vpop.f32.mrb[8].mxu0  ;;  %v553_v2 = vadd.f32 %v3937_v56, %v3883_v58  ;;  %v551_v5 = vadd.f32 %v3937_v56, %v3874_v35 }
 0x208   :  { %3592 = vpow2.f32 %v834_v32  ;;  %v836_v40 = vmul.f32 1.442695, %v825_v33  ;;  %v810_v41 = vrot.slane %v3917_v38, 4  ;;  %v3920_v39 = vpop.f32.mrb[9].mxu0  ;;  %v552_v6 = vadd.f32 %v3937_v56, %v3878_v42 }
 0x209   :  { %3594 = vpow2.f32 %v830_v36  ;;  %v832_v43 = vmul.f32 1.442695, %v823_v37  ;;  %v798_v44 = vrot.slane %v3920_v39, 4  ;;  %v3923_v45 = vpop.f32.mrb[10].mxu0  ;;  %v554_v8 = vadd.f32 %v3937_v56, %v3886_v1 }
 0x20a   :  { %3596 = vpow2.f32 %v836_v40  ;;  %v811_v47 = vmax.f32 %v3917_v38, %v810_v41  ;;  %v816_v48 = vrot.slane %v3923_v45, 4  ;;  %v3928_v49 = vpop.f32.mrb[11].mxu0 }
 0x20b   :  { %3598 = vpow2.f32 %v832_v43  ;;  %v799_v50 = vmax.f32 %v3920_v39, %v798_v44  ;;  %v804_v51 = vrot.slane %v3928_v49, 4 }
 0x20c   :  { %v812_v52 = vrot.slane %v811_v47, 2  ;;  %v817_v53 = vmax.f32 %v3923_v45, %v816_v48 }
 0x20d   :  { %v800_v54 = vrot.slane %v799_v50, 2  ;;  %v805_v55 = vmax.f32 %v3928_v49, %v804_v51 }
 0x20e   :  { %v813_v57 = vmax.f32 %v811_v47, %v812_v52  ;;  %v818_v59 = vrot.slane %v817_v53, 2 }
 0x20f   :  { %v801_v60 = vmax.f32 %v799_v50, %v800_v54  ;;  %v806_v61 = vrot.slane %v805_v55, 2 }
 0x210   :  { %v814_v62 = vrot.slane %v813_v57, 1  ;;  %v819_v63 = vmax.f32 %v817_v53, %v818_v59 }
 0x211   :  { %v802_v3 = vrot.slane %v801_v60, 1  ;;  %v807_v14 = vmax.f32 %v805_v55, %v806_v61 }
 0x212   :  { %v3593_v4 = vpop.eup %3592  ;;  %v815_v13 = vmax.f32 %v813_v57, %v814_v62  ;;  %v820_v19 = vrot.slane %v819_v63, 1 }
 0x213   :  { %v3595_v9 = vpop.eup %3594  ;;  %v848_v10 = vmul.f32 %v3593_v4, %v553_v2  ;;  %v914_v12 = vrot.slane %v3593_v4, 4  ;;  %v803_v58 = vmax.f32 %v801_v60, %v802_v3  ;;  %v808_v51 = vrot.slane %v807_v14, 1 }
 0x214   :  { %v3597_v15 = vpop.eup %3596  ;;  %v846_v17 = vmul.f32 %v3595_v9, %v551_v5  ;;  %v902_v18 = vrot.slane %v3595_v9, 4  ;;  %v828_v37 = vsub.f32 %v3917_v38, %v815_v13  ;;  %v821_v55 = vmax.f32 %v819_v63, %v820_v19 }
 0x215   :  { %v3599_v20 = vpop.eup %3598  ;;  %v866_v23 = vrot.slane %v848_v10, 4  ;;  %v915_v24 = vadd.f32 %v3593_v4, %v914_v12  ;;  %v849_v35 = vmul.f32 %v3597_v15, %v554_v8  ;;  %v920_v27 = vrot.slane %v3597_v15, 4 }
 0x216   :  { %v854_v29 = vrot.slane %v846_v17, 4  ;;  %v903_v42 = vadd.f32 %v3595_v9, %v902_v18  ;;  %v847_v31 = vmul.f32 %v3599_v20, %v552_v6  ;;  %v908_v32 = vrot.slane %v3599_v20, 4 }
 0x217   :  { %v867_v1 = vadd.f32 %v866_v23, %v848_v10  ;;  %v916_v33 = vrot.slane %v915_v24, 2  ;;  %v921_v36 = vadd.f32 %v3597_v15, %v920_v27  ;;  %v872_v41 = vrot.slane %v849_v35, 4 }
 0x218   :  { %v904_v40 = vrot.slane %v903_v42, 2  ;;  %v860_v43 = vrot.slane %v847_v31, 4  ;;  %v909_v44 = vadd.f32 %v3599_v20, %v908_v32  ;;  %v855_v48 = vadd.f32 %v854_v29, %v846_v17 }
 0x219   :  { %v917_v47 = vadd.f32 %v916_v33, %v915_v24  ;;  %v922_v50 = vrot.slane %v921_v36, 2  ;;  %v842_v60 = vmul.f32 1.442695, %v828_v37  ;;  %v826_v61 = vsub.f32 %v3920_v39, %v803_v58 }
 0x21a   :  { %v905_v52 = vadd.f32 %v904_v40, %v903_v42  ;;  %v861_v53 = vadd.f32 %v860_v43, %v847_v31  ;;  %v910_v54 = vrot.slane %v909_v44, 2  ;;  %v868_v62 = vrot.slane %v867_v1, 2 }
 0x21b   :  { %v918_v57 = vrot.slane %v917_v47, 1  ;;  %v923_v59 = vadd.f32 %v922_v50, %v921_v36  ;;  %v873_v38 = vadd.f32 %v872_v41, %v849_v35  ;;  %v856_v5 = vrot.slane %v855_v48, 2 }
 0x21c   :  { %v906_v2 = vrot.slane %v905_v52, 1  ;;  %v911_v3 = vadd.f32 %v910_v54, %v909_v44  ;;  %3600 = vpow2.f32 %v842_v60  ;;  %v862_v9 = vrot.slane %v861_v53, 2 }
 0x21d   :  { %v919_v4 = vadd.f32 %v918_v57, %v917_v47  ;;  %v924_v6 = vrot.slane %v923_v59, 1  ;;  %v829_v12 = vsub.f32 %v3923_v45, %v821_v55  ;;  %v838_v13 = vmul.f32 1.442695, %v826_v61 }
 0x21e   :  { %v907_v8 = vadd.f32 %v906_v2, %v905_v52  ;;  %v912_v10 = vrot.slane %v911_v3, 1  ;;  %v809_v15 = vmax.f32 %v807_v14, %v808_v51  ;;  %v857_v18 = vadd.f32 %v856_v5, %v855_v48 }
 0x21f   :  { %3602 = vrcp.f32 %v919_v4  ;;  %v925_v63 = vadd.f32 %v924_v6, %v923_v59  ;;  %v844_v39 = vmul.f32 1.442695, %v829_v12  ;;  %v869_v19 = vadd.f32 %v868_v62, %v867_v1 }
 0x220   :  { %3604 = vrcp.f32 %v907_v8  ;;  %v913_v17 = vadd.f32 %v912_v10, %v911_v3  ;;  %v827_v58 = vsub.f32 %v3928_v49, %v809_v15  ;;  %v874_v20 = vrot.slane %v873_v38, 2 }
 0x221   :  { %3606 = vrcp.f32 %v925_v63  ;;  %v863_v23 = vadd.f32 %v862_v9, %v861_v53  ;;  %v870_v35 = vrot.slane %v869_v19, 1  ;;  %v858_v27 = vrot.slane %v857_v18, 1 }
 0x222   :  { %3608 = vrcp.f32 %v913_v17  ;;  %v840_v24 = vmul.f32 1.442695, %v827_v58  ;;  %v875_v45 = vadd.f32 %v874_v20, %v873_v38  ;;  %v557_v14 = vadd.f32 %v3937_v56, %v3895_v28 }
 0x223   :  { %3610 = vpow2.f32 %v838_v13  ;;  %v864_v31 = vrot.slane %v863_v23, 1  ;;  %v871_v49 = vadd.f32 %v870_v35, %v869_v19  ;;  %v859_v36 = vadd.f32 %v858_v27, %v857_v18 }
 0x224   :  { %3612 = vpow2.f32 %v844_v39  ;;  %v876_v29 = vrot.slane %v875_v45, 1  ;;  %v555_v28 = vadd.f32 %v3937_v56, %v3889_v11  ;;  %v558_v55 = vadd.f32 %v3937_v56, %v3898_v34 }
 0x225   :  { %3614 = vpow2.f32 %v840_v24  ;;  %v865_v48 = vadd.f32 %v864_v31, %v863_v23  ;;  %v556_v61 = vadd.f32 %v3937_v56, %v3892_v16 }
 0x226   :  { %v3601_v42 = vpop.eup %3600  ;;  %v877_v41 = vadd.f32 %v876_v29, %v875_v45 }
 0x227   :  { %v938_v32 = vrot.slane %v3601_v42, 4  ;;  %v852_v33 = vmul.f32 %v3601_v42, %v557_v14 }
 0x229   :  { %v3603_v1 = vpop.eup %3602  ;;  %v939_v40 = vadd.f32 %v3601_v42, %v938_v32  ;;  %v890_v43 = vrot.slane %v852_v33, 4 }
 0x22a   :  { %v3605_v37 = vpop.eup %3604  ;;  %v960_v44 = vmul.f32 %v3603_v1, %v871_v49 }
 0x22b   :  { %v3607_v47 = vpop.eup %3606  ;;  %v958_v50 = vmul.f32 %v3605_v37, %v859_v36  ;;  %v940_v52 = vrot.slane %v939_v40, 2  ;;  %v891_v57 = vadd.f32 %v890_v43, %v852_v33 }
 0x22c   :  { %v3609_v51 = vpop.eup %3608  ;;  %v961_v53 = vmul.f32 %v3607_v47, %v877_v41  ;;  %v968_v45 = vpack.c.bf16 %v960_v44, %v960_v44 }
 0x22d   :  { %v3611_v54 = vpop.eup %3610  ;;  %v959_v59 = vmul.f32 %v3609_v51, %v865_v48  ;;  %v941_v62 = vadd.f32 %v940_v52, %v939_v40  ;;  %v892_v63 = vrot.slane %v891_v57, 2  ;;  %v966_v20 = vpack.c.bf16 %v958_v50, %v958_v50 }
 0x22e   :  { %v3613_v60 = vpop.eup %3612  ;;  %v850_v2 = vmul.f32 %v3611_v54, %v555_v28  ;;  %v926_v38 = vrot.slane %v3611_v54, 4  ;;  %v969_v29 = vpack.c.bf16 %v961_v53, %v961_v53  ;;  %v988_v43 = vunpack.c.l.b16 %v968_v45  ;;  %v3523_v45 = vld [vmem:[#allocation6 + $0xd8] sm:$0xff]  }
 0x22f   :  { %v3615_v3 = vpop.eup %3614  ;;  %v944_v4 = vrot.slane %v3613_v60, 4  ;;  %v853_v5 = vmul.f32 %v3613_v60, %v558_v55  ;;  %v942_v6 = vrot.slane %v941_v62, 1  ;;  %v967_v18 = vpack.c.bf16 %v959_v59, %v959_v59 }
 0x230   :  { %v878_v11 = vrot.slane %v850_v2, 4  ;;  %v927_v8 = vadd.f32 %v3611_v54, %v926_v38  ;;  %v851_v9 = vmul.f32 %v3615_v3, %v556_v61  ;;  %v932_v12 = vrot.slane %v3615_v3, 4 }
 0x231   :  { %v945_v10 = vadd.f32 %v3613_v60, %v944_v4  ;;  %v896_v34 = vrot.slane %v853_v5, 4  ;;  %v943_v17 = vadd.f32 %v942_v6, %v941_v62  ;;  %v893_v24 = vadd.f32 %v892_v63, %v891_v57 }
 0x232   :  { %v928_v13 = vrot.slane %v927_v8, 2  ;;  %v884_v15 = vrot.slane %v851_v9, 4  ;;  %v933_v16 = vadd.f32 %v3615_v3, %v932_v12  ;;  %v879_v56 = vadd.f32 %v878_v11, %v850_v2 }
 0x233   :  { %v946_v39 = vrot.slane %v945_v10, 2  ;;  %v897_v19 = vadd.f32 %v896_v34, %v853_v5  ;;  %3616 = vrcp.f32 %v943_v17  ;;  %v987_v33 = vunpack.c.l.b16 %v967_v18 }
 0x234   :  { %v929_v58 = vadd.f32 %v928_v13, %v927_v8  ;;  %v934_v23 = vrot.slane %v933_v16, 2  ;;  %v885_v14 = vadd.f32 %v884_v15, %v851_v9  ;;  %v880_v31 = vrot.slane %v879_v56, 2 }
 0x235   :  { %v947_v35 = vadd.f32 %v946_v39, %v945_v10  ;;  %v898_v1 = vrot.slane %v897_v19, 2  ;;  %v986_v36 = vunpack.c.l.b16 %v966_v20  ;;  %v894_v40 = vrot.slane %v893_v24, 1  ;;  %v3519_v20 = vld [vmem:[#allocation6 + $0xb8] sm:$0xff]  }
 0x236   :  { %v930_v27 = vrot.slane %v929_v58, 1  ;;  %v935_v42 = vadd.f32 %v934_v23, %v933_v16  ;;  %v886_v47 = vrot.slane %v885_v14, 2  ;;  %v989_v48 = vunpack.c.l.b16 %v969_v29  ;;  %3412 = vmatpush3.bf16.msra.mxu0 %v3519_v20  ;;  %v3520_v23 = vld [vmem:[#allocation6 + $0xc0] sm:$0xff]  }
 0x237   :  { %v948_v32 = vrot.slane %v947_v35, 1  ;;  %v995_v44 = vsel %vm994_vm2, %v987_v33, %v986_v36  ;;  %v881_v51 = vadd.f32 %v880_v31, %v879_v56  ;;  %v899_v52 = vadd.f32 %v898_v1, %v897_v19 }
 0x238   :  { %v931_v49 = vadd.f32 %v930_v27, %v929_v58  ;;  %v936_v37 = vrot.slane %v935_v42, 1  ;;  %v997_v28 = vsel %vm996_vm3, %v988_v43, %v995_v44  ;;  %v895_v54 = vadd.f32 %v894_v40, %v893_v24  ;;  %v3521_v24 = vld [vmem:[#allocation6 + $0xc8] sm:$0xff]   ;;  %v3524_v27 = vld [vmem:[#allocation6 + $0xe0] sm:$0xff]   ;;  %v3527_v40 = vld [vmem:[#allocation6 + $0xf8] sm:$0xff]  }
 0x239   :  { %v949_v41 = vadd.f32 %v948_v32, %v947_v35  ;;  %v999_v53 = vsel %vm998_vm4, %v989_v48, %v997_v28  ;;  %v887_v57 = vadd.f32 %v886_v47, %v885_v14  ;;  %v882_v59 = vrot.slane %v881_v51, 1  ;;  %v3522_v35 = vld [vmem:[#allocation6 + $0xd0] sm:$0xff]   ;;  %v3525_v14 = vld [vmem:[#allocation6 + $0xe8] sm:$0xff]   ;;  %v287_v43 = vld [vmem:[#allocation7 + $0x20] sm:$0xff] }
 0x23a   :  { %3618 = vrcp.f32 %v931_v49  ;;  %v937_v50 = vadd.f32 %v936_v37, %v935_v42  ;;  %v900_v61 = vrot.slane %v899_v52, 1  ;;  %v976_v29 = vsub.s32 3, %v3858_v22  ;;  %v3526_v37 = vld [vmem:[#allocation6 + $0xf0] sm:$0xff]   ;;  %v284_v47 = vld [vmem:[#allocation7 + $0x8] sm:$0xff]  ;;  %v295_v28 = vld [vmem:[#allocation7 + $0x60] sm:$0xff] }
 0x23b   :  { %3620 = vrcp.f32 %v949_v41  ;;  %v888_v62 = vrot.slane %v887_v57, 1  ;;  %v883_v2 = vadd.f32 %v882_v59, %v881_v51  ;;  %v283_v41 = vld [vmem:[#allocation7] sm:$0xff] }
 0x23c   :  { %3622 = vrcp.f32 %v937_v50  ;;  %v901_v3 = vadd.f32 %v900_v61, %v899_v52  ;;  %v977_v42 = vrot.slane %v3866_v26, %v976_v29  ;;  %v3053_v48 = vcombine.low %v283_v41, %v287_v43  ;;  %v288_v50 = vld [vmem:[#allocation7 + $0x28] sm:$0xff]  ;;  %v291_v51 = vld [vmem:[#allocation7 + $0x40] sm:$0xff] }
 0x23d   :  { %v3617_v55 = vpop.eup %3616  ;;  %v889_v6 = vadd.f32 %v888_v62, %v887_v57  ;;  %v3054_v44 = vcombine.high %v283_v41, %v287_v43  ;;  %v3055_v52 = vcombine.low %v284_v47, %v288_v50  ;;  %v299_v57 = vld [vmem:[#allocation7 + $0x80] sm:$0xff]  ;;  %v324_v43 = vld [vmem:[#allocation7 + $0x148] sm:$0xff] }
 0x23e   :  { %v964_v60 = vmul.f32 %v3617_v55, %v895_v54  ;;  %v3062_v54 = vcombine.high %v291_v51, %v295_v28  ;;  %v3061_v55 = vcombine.low %v291_v51, %v295_v28  ;;  %v303_v59 = vld [vmem:[#allocation7 + $0xa0] sm:$0xff]  ;;  %v336_v51 = vld [vmem:[#allocation7 + $0x1a8] sm:$0xff] }
 0x23f   :  { %1649 = vmatprep.subr.bf16.mxu0 %v3054_v44  ;;  %v3069_v61 = vcombine.low %v299_v57, %v303_v59  ;;  %v307_v62 = vld [vmem:[#allocation7 + $0xc0] sm:$0xff] }
 0x240   :  { %v972_v12 = vpack.c.bf16 %v964_v60, %v964_v60  ;;  %v3070_v60 = vcombine.high %v299_v57, %v303_v59  ;;  %v340_v57 = vld [vmem:[#allocation7 + $0x1c8] sm:$0xff] }
 0x242   :  { %v992_v39 = vunpack.c.l.b16 %v972_v12 }
 0x244   :  { %v3619_v38 = vpop.eup %3618 }
 0x245   :  { %v3621_v4 = vpop.eup %3620  ;;  %v962_v5 = vmul.f32 %v3619_v38, %v883_v2  ;;  %v311_v2 = vld [vmem:[#allocation7 + $0xe0] sm:$0xff] }
 0x246   :  { %v965_v11 = vmul.f32 %v3621_v4, %v901_v3  ;;  %v3623_v8 = vpop.eup %3622  ;;  %v3078_v38 = vcombine.high %v307_v62, %v311_v2  ;;  %v3077_v3 = vcombine.low %v307_v62, %v311_v2  ;;  %v315_v4 = vld [vmem:[#allocation7 + $0x100] sm:$0xff] }
 0x247   :  { %v970_v9 = vpack.c.bf16 %v962_v5, %v962_v5  ;;  %v963_v10 = vmul.f32 %v3623_v8, %v889_v6  ;;  %v319_v5 = vld [vmem:[#allocation7 + $0x120] sm:$0xff] }
 0x248   :  { %v973_v13 = vpack.c.bf16 %v965_v11, %v965_v11  ;;  %v3086_v6 = vcombine.high %v315_v4, %v319_v5  ;;  %v3085_v11 = vcombine.low %v315_v4, %v319_v5  ;;  %v323_v8 = vld [vmem:[#allocation7 + $0x140] sm:$0xff]  ;;  %v286_v4 = vld [vmem:[#allocation7 + $0x18] sm:$0xff] }
 0x249   :  { %v990_v63 = vunpack.c.l.b16 %v970_v9  ;;  %v971_v34 = vpack.c.bf16 %v963_v10, %v963_v10  ;;  %v327_v9 = vld [vmem:[#allocation7 + $0x160] sm:$0xff] }
 0x24a   :  { %v993_v16 = vunpack.c.l.b16 %v973_v13  ;;  %v3094_v10 = vcombine.high %v323_v8, %v327_v9  ;;  %v3093_v12 = vcombine.low %v323_v8, %v327_v9 }
 0x24b   :  { %v1001_v15 = vsel %vm1000_vm5, %v990_v63, %v999_v53  ;;  %v991_v17 = vunpack.c.l.b16 %v971_v34  ;;  %v3056_v53 = vcombine.high %v284_v47, %v288_v50  ;;  %v331_v63 = vld [vmem:[#allocation7 + $0x180] sm:$0xff]  ;;  %v328_v47 = vld [vmem:[#allocation7 + $0x168] sm:$0xff] }
 0x24c   :  { %v335_v34 = vld [vmem:[#allocation7 + $0x1a0] sm:$0xff]  ;;  %v3096_v44 = vcombine.high %v324_v43, %v328_v47  ;;  %v332_v50 = vld [vmem:[#allocation7 + $0x188] sm:$0xff]  ;;  %v3095_v28 = vcombine.low %v324_v43, %v328_v47 }
 0x24d   :  { %v1003_v56 = vsel %vm1002_vm6, %v991_v17, %v1001_v15  ;;  %v3102_v13 = vcombine.high %v331_v63, %v335_v34  ;;  %v3101_v15 = vcombine.low %v331_v63, %v335_v34  ;;  %v1101_v17 = vsub.s32 4, %v3858_v22 }
 0x24e   :  { %v1005_v18 = vsel %vm1004_vm7, %v992_v39, %v1003_v56 }
 0x24f   :  { %v1007_v58 = vsel %vm1006_vm8, %v993_v16, %v1005_v18  ;;  %v1102_v39 = vrot.slane %v3866_v26, %v1101_v17  ;;  %vm2442_vm8 = vcmask 1042432  }
 0x250   :  { %v1008_v19 = vpack.c.b16 %v1007_v58, %v1007_v58 }
 0x252   :  { %3394 = vmatmul.mubr.bf16.vlgmr.msra.gmra.mrb[16].mxu1 %v1008_v19 }
 0x253   :  { %3433 = vmatprep.mubr.msk.bf16.mxu1 %vm3723_vm0, %v3722_v0  ;;  %3418 = vmatpush3.bf16.msra.mxu1 %v3520_v23  ;;  %v292_v23 = vld [vmem:[#allocation7 + $0x48] sm:$0xff] }
 0x254   :  { %3419 = vmatprep.subr.bf16.mxu1 %v3722_v0 }
 0x257   :  { %3420 = vmatpush3.bf16.msra.mxu1 %v3521_v24  ;;  %v296_v24 = vld [vmem:[#allocation7 + $0x68] sm:$0xff] }
 0x258   :  { %3421 = vmatprep.subr.bf16.mxu1 %v3722_v0 }
 0x25b   :  { %3422 = vmatpush3.bf16.msra.mxu1 %v3522_v35 }
 0x25c   :  { %3423 = vmatprep.subr.bf16.mxu1 %v3722_v0 }
 0x25f   :  { %3424 = vmatpush3.bf16.msra.mxu1 %v3523_v45 }
 0x260   :  { %3425 = vmatprep.subr.bf16.mxu1 %v3722_v0 }
 0x263   :  { %3426 = vmatpush3.bf16.msra.mxu1 %v3524_v27  ;;  %v3064_v27 = vcombine.high %v292_v23, %v296_v24 }
 0x264   :  { %3427 = vmatprep.subr.bf16.mxu1 %v3722_v0 }
 0x267   :  { %3428 = vmatpush3.bf16.msra.mxu1 %v3525_v14  ;;  %v300_v14 = vld [vmem:[#allocation7 + $0x88] sm:$0xff] }
 0x268   :  { %3429 = vmatprep.subr.bf16.mxu1 %v3722_v0 }
 0x26b   :  { %3430 = vmatpush3.bf16.msra.mxu1 %v3526_v37  ;;  %v316_v37 = vld [vmem:[#allocation7 + $0x108] sm:$0xff] }
 0x26c   :  { %3431 = vmatprep.subr.bf16.mxu1 %v3722_v0 }
 0x26f   :  { %3432 = vmatpush3.bf16.msra.mxu1 %v3527_v40  ;;  %v320_v40 = vld [vmem:[#allocation7 + $0x128] sm:$0xff] }
 0x270   :  { %1690 = vmatprep.subr.bf16.mxu1 %v3056_v53  ;;  %v3088_v41 = vcombine.high %v316_v37, %v320_v40  ;;  %v3103_v53 = vcombine.low %v332_v50, %v336_v51 }
 0x325   :  { %v1092_v31 = vpop.f32.mrb[16].mxu1 }
 0x326   :  { %v3973_v32 = vadd.f32 %v1092_v31, %v977_v42  ;;  %v3395_v33 = vpop.f32.mrb[17].mxu1  ;;  %v304_v42 = vld [vmem:[#allocation7 + $0xa8] sm:$0xff]  ;;  %v3063_v31 = vcombine.low %v292_v23, %v296_v24 }
 0x327   :  { %v1095_v49 = vpop.f32.mrb[18].mxu1  ;;  %v3072_v26 = vcombine.high %v300_v14, %v304_v42  ;;  %v308_v33 = vld [vmem:[#allocation7 + $0xc8] sm:$0xff] }
 0x328   :  { %v1098_v1 = vpack.c.bf16 %v3973_v32, %v3973_v32  ;;  %v3396_v36 = vpop.f32.mrb[19].mxu1  ;;  %v312_v49 = vld [vmem:[#allocation7 + $0xe8] sm:$0xff] }
 0x329   :  { %v3080_v36 = vcombine.high %v308_v33, %v312_v49 }
 0x32a   :  { %3414 = vmatmul.mubr.bf16.vlgmr.msra.gmra.mrb[12].mxu0 %v1098_v1  ;;  %v3071_v1 = vcombine.low %v300_v14, %v304_v42  ;;  %v302_v14 = vld [vmem:[#allocation7 + $0x98] sm:$0xff] }
 0x32b   :  { %1681 = vmatprep.mubr.bf16.mxu0 %v3724_v7  ;;  %1650 = vmatpush1.bf16.msra.mxu0 %v3053_v48  ;;  %v3087_v48 = vcombine.low %v316_v37, %v320_v40  ;;  %v306_v42 = vld [vmem:[#allocation7 + $0xb8] sm:$0xff] }
 0x32c   :  { %1651 = vmatprep.subr.bf16.mxu0 %v3062_v54  ;;  %v339_v54 = vld [vmem:[#allocation7 + $0x1c0] sm:$0xff]  ;;  %v310_v37 = vld [vmem:[#allocation7 + $0xd8] sm:$0xff] }
 0x32d   :  { %v314_v40 = vld [vmem:[#allocation7 + $0xf8] sm:$0xff] }
 0x32e   :  { %v3084_v47 = vcombine.high %v310_v37, %v314_v40 }
 0x32f   :  { %1652 = vmatpush1.bf16.msra.mxu0 %v3061_v55  ;;  %v343_v55 = vld [vmem:[#allocation7 + $0x1e0] sm:$0xff] }
 0x330   :  { %1653 = vmatprep.subr.bf16.mxu0 %v3070_v60  ;;  %v3110_v59 = vcombine.high %v339_v54, %v343_v55  ;;  %v344_v60 = vld [vmem:[#allocation7 + $0x1e8] sm:$0xff] }
 0x331   :  { %v3111_v62 = vcombine.low %v340_v57, %v344_v60  ;;  %v3112_v2 = vcombine.high %v340_v57, %v344_v60  ;;  %v326_v57 = vld [vmem:[#allocation7 + $0x158] sm:$0xff] }
 0x333   :  { %1654 = vmatpush1.bf16.msra.mxu0 %v3069_v61  ;;  %v3109_v61 = vcombine.low %v339_v54, %v343_v55  ;;  %v325_v54 = vld [vmem:[#allocation7 + $0x150] sm:$0xff] }
 0x334   :  { %1655 = vmatprep.subr.bf16.mxu0 %v3078_v38  ;;  %v285_v38 = vld [vmem:[#allocation7 + $0x10] sm:$0xff] }
 0x335   :  { %v329_v55 = vld [vmem:[#allocation7 + $0x170] sm:$0xff] }
 0x337   :  { %1656 = vmatpush1.bf16.msra.mxu0 %v3077_v3  ;;  %v289_v3 = vld [vmem:[#allocation7 + $0x30] sm:$0xff] }
 0x338   :  { %1657 = vmatprep.subr.bf16.mxu0 %v3086_v6  ;;  %v3058_v5 = vcombine.high %v285_v38, %v289_v3  ;;  %v290_v6 = vld [vmem:[#allocation7 + $0x38] sm:$0xff] }
 0x339   :  { %v3059_v8 = vcombine.low %v286_v4, %v290_v6  ;;  %v3060_v9 = vcombine.high %v286_v4, %v290_v6  ;;  %v334_v4 = vld [vmem:[#allocation7 + $0x198] sm:$0xff]  ;;  %v3097_v6 = vcombine.low %v325_v54, %v329_v55 }
 0x33b   :  { %1658 = vmatpush1.bf16.msra.mxu0 %v3085_v11  ;;  %v3057_v11 = vcombine.low %v285_v38, %v289_v3  ;;  %v333_v38 = vld [vmem:[#allocation7 + $0x190] sm:$0xff] }
 0x33c   :  { %1659 = vmatprep.subr.bf16.mxu0 %v3094_v10  ;;  %v1196_v10 = vsub.s32 5, %v3858_v22  ;;  %v337_v3 = vld [vmem:[#allocation7 + $0x1b0] sm:$0xff] }
 0x33f   :  { %1660 = vmatpush1.bf16.msra.mxu0 %v3093_v12  ;;  %v3989_v12 = vld [vmem:[%s4207_s7] sm:$0xff] }
 0x340   :  { %1661 = vmatprep.subr.bf16.mxu0 %v3102_v13  ;;  %v1197_v63 = vrot.slane %v3989_v12, %v1196_v10 }
 0x343   :  { %1662 = vmatpush1.bf16.msra.mxu0 %v3101_v15 }
 0x344   :  { %1663 = vmatprep.subr.bf16.mxu0 %v3110_v59  ;;  %v330_v59 = vld [vmem:[#allocation7 + $0x178] sm:$0xff] }
 0x347   :  { %1664 = vmatpush1.bf16.msra.mxu0 %v3109_v61 }
 0x348   :  { %1731 = vmatprep.subr.bf16.mxu0 %v3058_v5  ;;  %v338_v5 = vld [vmem:[#allocation7 + $0x1b8] sm:$0xff] }
 0x3fd   :  { %v1185_v16 = vpop.f32.mrb[12].mxu0 }
 0x3fe   :  { %v1186_v56 = vadd.f32 %v1185_v16, %v1102_v39  ;;  %v3415_v18 = vpop.f32.mrb[13].mxu0  ;;  %v293_v39 = vld [vmem:[#allocation7 + $0x50] sm:$0xff] }
 0x3ff   :  { %v1188_v58 = vpop.f32.mrb[14].mxu0  ;;  %v294_v18 = vld [vmem:[#allocation7 + $0x58] sm:$0xff] }
 0x400   :  { %v1191_v19 = vmax.f32 %v1186_v56, 0.0  ;;  %v3416_v20 = vpop.f32.mrb[15].mxu0  ;;  %v297_v56 = vld [vmem:[#allocation7 + $0x70] sm:$0xff]  ;;  %v298_v58 = vld [vmem:[#allocation7 + $0x78] sm:$0xff] }
 0x401   :  { %v3066_v24 = vcombine.high %v293_v39, %v297_v56 }
 0x402   :  { %v1192_v35 = vadd.f32 %v1191_v19, %v3973_v32  ;;  %v3079_v32 = vcombine.low %v308_v33, %v312_v49  ;;  %v3076_v49 = vcombine.high %v302_v14, %v306_v42 }
 0x404   :  { %v1193_v45 = vpack.c.bf16 %v1192_v35, %v1192_v35  ;;  %v3068_v35 = vcombine.high %v294_v18, %v298_v58 }
 0x406   :  { %3434 = vmatmul.mubr.bf16.vlgmr.msra.gmra.mrb[20].mxu1 %v1193_v45  ;;  %v301_v45 = vld [vmem:[#allocation7 + $0x90] sm:$0xff] }
 0x407   :  { %1691 = vmatpush1.bf16.msra.mxu1 %v3055_v52  ;;  %1722 = vmatprep.mubr.bf16.mxu1 %v3724_v7  ;;  %v3104_v52 = vcombine.high %v332_v50, %v336_v51  ;;  %v318_v50 = vld [vmem:[#allocation7 + $0x118] sm:$0xff] }
 0x408   :  { %1692 = vmatprep.subr.bf16.mxu1 %v3064_v27  ;;  %v305_v27 = vld [vmem:[#allocation7 + $0xb0] sm:$0xff]  ;;  %v322_v51 = vld [vmem:[#allocation7 + $0x138] sm:$0xff] }
 0x409   :  { %v3074_v33 = vcombine.high %v301_v45, %v305_v27  ;;  %v3091_v61 = vcombine.low %v318_v50, %v322_v51 }
 0x40b   :  { %1693 = vmatpush1.bf16.msra.mxu1 %v3063_v31  ;;  %v3065_v31 = vcombine.low %v293_v39, %v297_v56  ;;  %v3105_v39 = vcombine.low %v333_v38, %v337_v3 }
 0x40c   :  { %1694 = vmatprep.subr.bf16.mxu1 %v3072_v26  ;;  %v3067_v26 = vcombine.low %v294_v18, %v298_v58 }
 0x40f   :  { %1695 = vmatpush1.bf16.msra.mxu1 %v3071_v1  ;;  %v309_v1 = vld [vmem:[#allocation7 + $0xd0] sm:$0xff] }
 0x410   :  { %1696 = vmatprep.subr.bf16.mxu1 %v3080_v36  ;;  %v313_v36 = vld [vmem:[#allocation7 + $0xf0] sm:$0xff] }
 0x411   :  { %v3082_v43 = vcombine.high %v309_v1, %v313_v36 }
 0x413   :  { %1697 = vmatpush1.bf16.msra.mxu1 %v3079_v32  ;;  %v3073_v32 = vcombine.low %v301_v45, %v305_v27  ;;  %v3531_v45 = vld [vmem:[#allocation6 + $0x180] sm:$0xff]   ;;  %v3532_v27 = vld [vmem:[#allocation6 + $0x148] sm:$0xff]  }
 0x414   :  { %1698 = vmatprep.subr.bf16.mxu1 %v3088_v41  ;;  %v3075_v41 = vcombine.low %v302_v14, %v306_v42  ;;  %v3533_v14 = vld [vmem:[#allocation6 + $0x1c8] sm:$0xff]  }
 0x415   :  { %v3534_v42 = vld [vmem:[#allocation6 + $0x108] sm:$0xff]  }
 0x417   :  { %1699 = vmatpush1.bf16.msra.mxu1 %v3087_v48  ;;  %v317_v48 = vld [vmem:[#allocation7 + $0x110] sm:$0xff] }
 0x418   :  { %1700 = vmatprep.subr.bf16.mxu1 %v3096_v44  ;;  %v321_v44 = vld [vmem:[#allocation7 + $0x130] sm:$0xff] }
 0x419   :  { %v3089_v60 = vcombine.low %v317_v48, %v321_v44 }
 0x41b   :  { %1701 = vmatpush1.bf16.msra.mxu1 %v3095_v28  ;;  %v3081_v28 = vcombine.low %v309_v1, %v313_v36  ;;  %v3539_v1 = vld [vmem:[#allocation6 + $0x190] sm:$0xff]   ;;  %v3540_v36 = vld [vmem:[#allocation6 + $0x158] sm:$0xff]  }
 0x41c   :  { %1702 = vmatprep.subr.bf16.mxu1 %v3104_v52  ;;  %v3083_v52 = vcombine.low %v310_v37, %v314_v40  ;;  %v3541_v37 = vld [vmem:[#allocation6 + $0x1d8] sm:$0xff]  }
 0x41d   :  { %v3542_v40 = vld [vmem:[#allocation6 + $0x118] sm:$0xff]  }
 0x41f   :  { %1703 = vmatpush1.bf16.msra.mxu1 %v3103_v53  ;;  %v3090_v53 = vcombine.high %v317_v48, %v321_v44  ;;  %v3548_v48 = vld [vmem:[#allocation6 + $0x168] sm:$0xff]  }
 0x420   :  { %1704 = vmatprep.subr.bf16.mxu1 %v3112_v2  ;;  %v3100_v2 = vcombine.high %v326_v57, %v330_v59  ;;  %v3549_v44 = vld [vmem:[#allocation6 + $0x1e8] sm:$0xff]  }
 0x423   :  { %1705 = vmatpush1.bf16.msra.mxu1 %v3111_v62  ;;  %v3098_v62 = vcombine.high %v325_v54, %v329_v55  ;;  %v3556_v54 = vld [vmem:[#allocation6 + $0x178] sm:$0xff]  }
 0x424   :  { %1772 = vmatprep.subr.bf16.mxu1 %v3060_v9  ;;  %v3108_v9 = vcombine.high %v334_v4, %v338_v5  ;;  %v3557_v55 = vld [vmem:[#allocation6 + $0x1f8] sm:$0xff]  }
 0x4d9   :  { %v1280_v34 = vpop.f32.mrb[20].mxu1 }
 0x4da   :  { %v1281_v13 = vadd.f32 %v1280_v34, %v1197_v63  ;;  %v3435_v15 = vpop.f32.mrb[21].mxu1  ;;  %v341_v63 = vld [vmem:[#allocation7 + $0x1d0] sm:$0xff] }
 0x4db   :  { %v1283_v16 = vpop.f32.mrb[22].mxu1  ;;  %v345_v34 = vld [vmem:[#allocation7 + $0x1f0] sm:$0xff]  ;;  %v346_v15 = vld [vmem:[#allocation7 + $0x1f8] sm:$0xff] }
 0x4dc   :  { %v1286_v19 = vmax.f32 %v1281_v13, 0.0  ;;  %v3436_v20 = vpop.f32.mrb[23].mxu1  ;;  %v342_v13 = vld [vmem:[#allocation7 + $0x1d8] sm:$0xff]  ;;  %v3107_v16 = vcombine.low %v334_v4, %v338_v5  ;;  %v3114_v56 = vcombine.high %v341_v63, %v345_v34  ;;  %v3113_v58 = vcombine.low %v341_v63, %v345_v34 }
 0x4dd   :  { %v3116_v18 = vcombine.high %v342_v13, %v346_v15  ;;  %v3528_v20 = vld [vmem:[#allocation6 + $0x140] sm:$0xff]  }
 0x4de   :  { %v3994_v23 = vpack.c.bf16 %v1286_v19, %v1286_v19  ;;  %v3115_v19 = vcombine.low %v342_v13, %v346_v15 }
 0x4e0   :  { %1682 = vmatmul.mubr.bf16.vlgmr.msra.gmra.mrb[16].mxu0 %v3994_v23  ;;  %1723 = vmatmul.mubr.bf16.vlgmr.msra.gmra.mrb[24].mxu1 %v3994_v23 }
 0x4e1   :  { %1732 = vmatpush1.bf16.msra.mxu0 %v3057_v11  ;;  %1773 = vmatpush1.bf16.msra.mxu1 %v3059_v8  ;;  %v3099_v11 = vcombine.low %v326_v57, %v330_v59  ;;  %v3106_v8 = vcombine.high %v333_v38, %v337_v3  ;;  %v3558_v57 = vld [vmem:[#allocation6 + $0x138] sm:$0xff]  }
 0x4e2   :  { %1733 = vmatprep.subr.bf16.mxu0 %v3066_v24  ;;  %1774 = vmatprep.subr.bf16.mxu1 %v3068_v35  ;;  %v3529_v24 = vld [vmem:[#allocation6 + $0x1c0] sm:$0xff]   ;;  %v3559_v59 = vld [vmem:[#allocation6 + $0x1b8] sm:$0xff]  }
 0x4e3   :  { %1763 = vmatprep.mubr.bf16.mxu0 %v3724_v7  ;;  %1804 = vmatprep.mubr.bf16.mxu1 %v3724_v7  ;;  %v3092_v7 = vcombine.high %v318_v50, %v322_v51  ;;  %v3530_v35 = vld [vmem:[#allocation6 + $0x100] sm:$0xff]   ;;  %v3550_v50 = vld [vmem:[#allocation6 + $0x128] sm:$0xff]  }
 0x4e4   :  { %v3551_v51 = vld [vmem:[#allocation6 + $0x1a8] sm:$0xff]  }
 0x4e5   :  { %1734 = vmatpush1.bf16.msra.mxu0 %v3065_v31  ;;  %1775 = vmatpush1.bf16.msra.mxu1 %v3067_v26  ;;  %v3535_v31 = vld [vmem:[#allocation6 + $0x188] sm:$0xff]   ;;  %v3536_v26 = vld [vmem:[#allocation6 + $0x150] sm:$0xff]  }
 0x4e6   :  { %1735 = vmatprep.subr.bf16.mxu0 %v3074_v33  ;;  %1776 = vmatprep.subr.bf16.mxu1 %v3076_v49  ;;  %v3537_v33 = vld [vmem:[#allocation6 + $0x1d0] sm:$0xff]  }
 0x4e7   :  { %v3538_v49 = vld [vmem:[#allocation6 + $0x110] sm:$0xff]  }
 0x4e9   :  { %1736 = vmatpush1.bf16.msra.mxu0 %v3073_v32  ;;  %1777 = vmatpush1.bf16.msra.mxu1 %v3075_v41  ;;  %v3544_v32 = vld [vmem:[#allocation6 + $0x160] sm:$0xff]  }
 0x4ea   :  { %1737 = vmatprep.subr.bf16.mxu0 %v3082_v43  ;;  %1778 = vmatprep.subr.bf16.mxu1 %v3084_v47  ;;  %v3545_v41 = vld [vmem:[#allocation6 + $0x1e0] sm:$0xff]  }
 0x4eb   :  { %v3546_v43 = vld [vmem:[#allocation6 + $0x120] sm:$0xff]  }
 0x4ec   :  { %v3547_v47 = vld [vmem:[#allocation6 + $0x1a0] sm:$0xff]  }
 0x4ed   :  { %1738 = vmatpush1.bf16.msra.mxu0 %v3081_v28  ;;  %1779 = vmatpush1.bf16.msra.mxu1 %v3083_v52  ;;  %v3552_v28 = vld [vmem:[#allocation6 + $0x170] sm:$0xff]  }
 0x4ee   :  { %1739 = vmatprep.subr.bf16.mxu0 %v3090_v53  ;;  %1780 = vmatprep.subr.bf16.mxu1 %v3092_v7  ;;  %v3553_v52 = vld [vmem:[#allocation6 + $0x1f0] sm:$0xff]  }
 0x4ef   :  { %v3554_v53 = vld [vmem:[#allocation6 + $0x130] sm:$0xff]  }
 0x4f0   :  { %v3555_v7 = vld [vmem:[#allocation6 + $0x1b0] sm:$0xff]  }
 0x4f1   :  { %1740 = vmatpush1.bf16.msra.mxu0 %v3089_v60  ;;  %1781 = vmatpush1.bf16.msra.mxu1 %v3091_v61  ;;  %v3560_v60 = vld [vmem:[#allocation6 + $0x240] sm:$0xff]  }
 0x4f2   :  { %1741 = vmatprep.subr.bf16.mxu0 %v3098_v62  ;;  %1782 = vmatprep.subr.bf16.mxu1 %v3100_v2  ;;  %v3561_v61 = vld [vmem:[#allocation6 + $0x2c0] sm:$0xff]  }
 0x4f3   :  { %v4005_v62 = vld [vmem:[%s4206_s6] sm:$0xff]  ;;  %s4017_s6 = sld [smem:[#allocation2 + $0x1]] }
 0x4f4   :  { %v1292_v2 = vrot.slane %v4005_v62, %v3861_v25  ;;  %v1300_v38 = vrot.slane %v4005_v62, %v549_v46  ;;  %v1296_v3 = vrot.slane %v4005_v62, %v3872_v30  ;;  %v1304_v4 = vrot.slane %v4005_v62, %v976_v29  ;;  %v3563_v29 = vld [vmem:[#allocation6 + $0x280] sm:$0xff]  }
 0x4f5   :  { %1742 = vmatpush1.bf16.msra.mxu0 %v3097_v6  ;;  %1783 = vmatpush1.bf16.msra.mxu1 %v3099_v11 }
 0x4f6   :  { %1743 = vmatprep.subr.bf16.mxu0 %v3106_v8  ;;  %1784 = vmatprep.subr.bf16.mxu1 %v3108_v9 }
 0x4f9   :  { %1744 = vmatpush1.bf16.msra.mxu0 %v3105_v39  ;;  %1785 = vmatpush1.bf16.msra.mxu1 %v3107_v16  ;;  %s2386_s25 = sadd.s32 3, %s4017_s6 }
 0x4fa   :  { %1745 = vmatprep.subr.bf16.mxu0 %v3114_v56  ;;  %1786 = vmatprep.subr.bf16.mxu1 %v3116_v18 }
 0x4fd   :  { %1746 = vmatpush1.bf16.msra.mxu0 %v3113_v58  ;;  %1787 = vmatpush1.bf16.msra.mxu1 %v3115_v19 }
 0x4fe   :  { %3245 = vmatprep.subr.bf16.mxu0 %v3528_v20  ;;  %3267 = vmatprep.subr.bf16.mxu1 %v3529_v24 }
 0x500   :  { %1764 = vmatmul.mubr.bf16.vlgmr.msra.gmra.mrb[20].mxu0 %v3994_v23  ;;  %1805 = vmatmul.mubr.bf16.vlgmr.msra.gmra.mrb[28].mxu1 %v3994_v23  ;;  %v3543_v23 = vld [vmem:[#allocation6 + $0x198] sm:$0xff]  }
 0x501   :  { %3246 = vmatpush3.bf16.msra.mxu0 %v3530_v35  ;;  %3268 = vmatpush3.bf16.msra.mxu1 %v3531_v45  ;;  %v3562_v35 = vld [vmem:[#allocation6 + $0x200] sm:$0xff]  }
 0x502   :  { %3247 = vmatprep.subr.bf16.mxu0 %v3532_v27  ;;  %3269 = vmatprep.subr.bf16.mxu1 %v3533_v14  ;;  %v3564_v14 = vld [vmem:[#allocation6 + $0x248] sm:$0xff]  }
 0x505   :  { %3248 = vmatpush3.bf16.msra.mxu0 %v3534_v42  ;;  %3270 = vmatpush3.bf16.msra.mxu1 %v3535_v31  ;;  %v3565_v42 = vld [vmem:[#allocation6 + $0x2c8] sm:$0xff]  }
 0x506   :  { %3249 = vmatprep.subr.bf16.mxu0 %v3536_v26  ;;  %3271 = vmatprep.subr.bf16.mxu1 %v3537_v33  ;;  %v3566_v31 = vld [vmem:[#allocation6 + $0x208] sm:$0xff]   ;;  %v3568_v33 = vld [vmem:[#allocation6 + $0x250] sm:$0xff]  }
 0x507   :  { %v3567_v26 = vld [vmem:[#allocation6 + $0x288] sm:$0xff]  }
 0x509   :  { %3250 = vmatpush3.bf16.msra.mxu0 %v3538_v49  ;;  %3272 = vmatpush3.bf16.msra.mxu1 %v3539_v1  ;;  %v3569_v49 = vld [vmem:[#allocation6 + $0x2d0] sm:$0xff]  }
 0x50a   :  { %3251 = vmatprep.subr.bf16.mxu0 %v3540_v36  ;;  %3273 = vmatprep.subr.bf16.mxu1 %v3541_v37  ;;  %v3570_v1 = vld [vmem:[#allocation6 + $0x210] sm:$0xff]   ;;  %v3572_v37 = vld [vmem:[#allocation6 + $0x258] sm:$0xff]  }
 0x50b   :  { %v3571_v36 = vld [vmem:[#allocation6 + $0x290] sm:$0xff]  }
 0x50d   :  { %3252 = vmatpush3.bf16.msra.mxu0 %v3542_v40  ;;  %3274 = vmatpush3.bf16.msra.mxu1 %v3543_v23  ;;  %v3573_v40 = vld [vmem:[#allocation6 + $0x2d8] sm:$0xff]  }
 0x50e   :  { %3253 = vmatprep.subr.bf16.mxu0 %v3544_v32  ;;  %3275 = vmatprep.subr.bf16.mxu1 %v3545_v41  ;;  %v3574_v23 = vld [vmem:[#allocation6 + $0x218] sm:$0xff]   ;;  %v3576_v41 = vld [vmem:[#allocation6 + $0x260] sm:$0xff]  }
 0x50f   :  { %v3575_v32 = vld [vmem:[#allocation6 + $0x298] sm:$0xff]  }
 0x511   :  { %3254 = vmatpush3.bf16.msra.mxu0 %v3546_v43  ;;  %3276 = vmatpush3.bf16.msra.mxu1 %v3547_v47  ;;  %v3577_v43 = vld [vmem:[#allocation6 + $0x2e0] sm:$0xff]  }
 0x512   :  { %3255 = vmatprep.subr.bf16.mxu0 %v3548_v48  ;;  %3277 = vmatprep.subr.bf16.mxu1 %v3549_v44  ;;  %v3578_v47 = vld [vmem:[#allocation6 + $0x220] sm:$0xff]   ;;  %v4036_v44 = vand.u32 127, %v350_v21  ;;  %v1319_v21 = vsub.s32 7, %v3858_v22 }
 0x513   :  { %v3579_v48 = vld [vmem:[#allocation6 + $0x2a0] sm:$0xff]  }
 0x515   :  { %3256 = vmatpush3.bf16.msra.mxu0 %v3550_v50  ;;  %3278 = vmatpush3.bf16.msra.mxu1 %v3551_v51  ;;  %v3580_v50 = vld [vmem:[#allocation6 + $0x268] sm:$0xff]  }
 0x516   :  { %3257 = vmatprep.subr.bf16.mxu0 %v3552_v28  ;;  %3279 = vmatprep.subr.bf16.mxu1 %v3553_v52  ;;  %v3581_v51 = vld [vmem:[#allocation6 + $0x2e8] sm:$0xff]   ;;  %v2383_v28 = vstv %s4021_s2  ;;  %v2387_v52 = vstv %s2386_s25 }
 0x517   :  { %vm2384_vm9 = vcmp.eq.s32.totalorder %v4036_v44, %v2383_v28  ;;  %vm2388_vm10 = vcmp.eq.s32.totalorder %v4036_v44, %v2387_v52 }
 0x518   :  { %vm4060_vm13 = vmor %vm2384_vm9, %vm2388_vm10  ;;  %vm2400_vm9 = vcmp.eq.s32.totalorder %v3858_v22, 0  ;;  %vm2423_vm10 = vcmp.eq.s32.totalorder %v3858_v22, 1 }
 0x519   :  { %3258 = vmatpush3.bf16.msra.mxu0 %v3554_v53  ;;  %3280 = vmatpush3.bf16.msra.mxu1 %v3555_v7  ;;  %v2406_v53 = vstv %s4025_s22  ;;  %v2410_v7 = vstv %s2409_s26 }
 0x51a   :  { %3259 = vmatprep.subr.bf16.mxu0 %v3556_v54  ;;  %3281 = vmatprep.subr.bf16.mxu1 %v3557_v55  ;;  %v1315_v54 = vsub.s32 6, %v3858_v22  ;;  %v3582_v55 = vld [vmem:[#allocation6 + $0x228] sm:$0xff]   ;;  %vm4048_vm11 = vcmp.eq.s32.totalorder %v4036_v44, %v2406_v53  ;;  %vm2411_vm12 = vcmp.eq.s32.totalorder %v4036_v44, %v2410_v7 }
 0x51b   :  { %vm4073_vm15 = vmor %vm4048_vm11, %vm2411_vm12  ;;  %vm2438_vm11 = vcmask 23552   ;;  %vm2972_vm12 = vcmask 7168  }
 0x51d   :  { %3260 = vmatpush3.bf16.msra.mxu0 %v3558_v57  ;;  %3282 = vmatpush3.bf16.msra.mxu1 %v3559_v59  ;;  %v3583_v57 = vld [vmem:[#allocation6 + $0x2a8] sm:$0xff]   ;;  %v2392_v59 = vstv %s2391_s27 }
 0x51e   :  { %3289 = vmatprep.subr.bf16.mxu0 %v3560_v60  ;;  %3311 = vmatprep.subr.bf16.mxu1 %v3561_v61  ;;  %v3584_v60 = vld [vmem:[#allocation6 + $0x270] sm:$0xff]   ;;  %vm2393_vm14 = vcmp.eq.s32.totalorder %v4036_v44, %v2392_v59 }
 0x51f   :  { %v3585_v61 = vld [vmem:[#allocation6 + $0x2f0] sm:$0xff]   ;;  %vm4082_vm2 = vmor %vm4060_vm13, %vm2393_vm14 }
 0x5b3   :  { %v1683_v5 = vpop.f32.mrb[16].mxu0  ;;  %v1724_v6 = vpop.f32.mrb[24].mxu1 }
 0x5b4   :  { %v1684_v11 = vadd.f32 %v1683_v5, %v1292_v2  ;;  %v1725_v8 = vadd.f32 %v1724_v6, %v1300_v38  ;;  %v1685_v9 = vpop.f32.mrb[17].mxu0  ;;  %v1726_v63 = vpop.f32.mrb[25].mxu1  ;;  %v2415_v38 = vstv %s2414_s28  ;;  %v2397_v6 = vstv %s2396_s29 }
 0x5b5   :  { %v1686_v34 = vadd.f32 %v1685_v9, %v1296_v3  ;;  %v1727_v13 = vadd.f32 %v1726_v63, %v1304_v4  ;;  %v1687_v15 = vpop.f32.mrb[18].mxu0  ;;  %v1728_v39 = vpop.f32.mrb[26].mxu1  ;;  %v1308_v3 = vrot.slane %v4005_v62, %v1101_v17  ;;  %v1316_v4 = vrot.slane %v4005_v62, %v1315_v54  ;;  %v3587_v9 = vld [vmem:[#allocation6 + $0x2b0] sm:$0xff]  }
 0x5b6   :  { %v1813_v16 = vmax.f32 %v1684_v11, 0.0  ;;  %v1815_v56 = vmax.f32 %v1725_v8, 0.0  ;;  %v1688_v46 = vpop.f32.mrb[19].mxu0  ;;  %v1729_v18 = vpop.f32.mrb[27].mxu1  ;;  %v1312_v11 = vrot.slane %v4005_v62, %v1196_v10  ;;  %v1320_v17 = vrot.slane %v4005_v62, %v1319_v21  ;;  %v3586_v8 = vld [vmem:[#allocation6 + $0x230] sm:$0xff]   ;;  %v3589_v15 = vld [vmem:[#allocation6 + $0x2f8] sm:$0xff]  }
 0x5b7   :  { %v1814_v58 = vmax.f32 %v1686_v34, 0.0  ;;  %v1816_v19 = vmax.f32 %v1727_v13, 0.0  ;;  %vm2416_vm1 = vcmp.eq.s32.totalorder %v4036_v44, %v2415_v38  ;;  %v2420_v34 = vstv %s2419_s30  ;;  %v3588_v13 = vld [vmem:[#allocation6 + $0x278] sm:$0xff]  }
 0x5b8   :  { %v1821_v45 = vpack.c.bf16 %v1813_v16, %v1813_v16  ;;  %v1823_v27 = vpack.c.bf16 %v1815_v56, %v1815_v56  ;;  %vm2398_vm3 = vcmp.eq.s32.totalorder %v4036_v44, %v2397_v6  ;;  %vm4089_vm4 = vmor %vm4073_vm15, %vm2416_vm1  ;;  %vm2421_vm5 = vcmp.eq.s32.totalorder %v4036_v44, %v2420_v34 }
 0x5b9   :  { %v1822_v20 = vpack.c.bf16 %v1814_v58, %v1814_v58  ;;  %v1824_v24 = vpack.c.bf16 %v1816_v19, %v1816_v19  ;;  %vm2399_vm6 = vmor %vm4082_vm2, %vm2398_vm3 }
 0x5ba   :  { %vm2422_vm7 = vmor %vm4089_vm4, %vm2421_vm5 }
 0x5bb   :  { %2249 = vmatprep.mubr.bf16.mxu0 %v1822_v20  ;;  %2289 = vmatprep.mubr.bf16.mxu1 %v1824_v24 }
 0x5bc   :  { %2250 = vmatmul.mubr.bf16.vlgmr.msra.gmra.mrb[24].mxu0 %v1821_v45  ;;  %2290 = vmatmul.mubr.bf16.vlgmr.msra.gmra.mrb[32].mxu1 %v1823_v27  ;;  %v3591_v45 = vld [vmem:[#allocation6 + $0x2b8] sm:$0xff]   ;;  %v4097_v27 = vld [vmem:[%s4207_s7 + $0x8] sm:$0xff] }
 0x5bd   :  { %3290 = vmatpush3.bf16.msra.mxu0 %v3562_v35  ;;  %3312 = vmatpush3.bf16.msra.mxu1 %v3563_v29  ;;  %v3590_v29 = vld [vmem:[#allocation6 + $0x238] sm:$0xff]   ;;  %v2686_v34 = vrot.slane %v4097_v27, %v3861_v25 }
 0x5be   :  { %3291 = vmatprep.subr.bf16.mxu0 %v3564_v14  ;;  %3313 = vmatprep.subr.bf16.mxu1 %v3565_v42 }
 0x5c1   :  { %3292 = vmatpush3.bf16.msra.mxu0 %v3566_v31  ;;  %3314 = vmatpush3.bf16.msra.mxu1 %v3567_v26 }
 0x5c2   :  { %3293 = vmatprep.subr.bf16.mxu0 %v3568_v33  ;;  %3315 = vmatprep.subr.bf16.mxu1 %v3569_v49 }
 0x5c5   :  { %3294 = vmatpush3.bf16.msra.mxu0 %v3570_v1  ;;  %3316 = vmatpush3.bf16.msra.mxu1 %v3571_v36  ;;  %v2437_v1 = vrot.slane %v4097_v27, 2 }
 0x5c6   :  { %3295 = vmatprep.subr.bf16.mxu0 %v3572_v37  ;;  %3317 = vmatprep.subr.bf16.mxu1 %v3573_v40 }
 0x5c9   :  { %3296 = vmatpush3.bf16.msra.mxu0 %v3574_v23  ;;  %3318 = vmatpush3.bf16.msra.mxu1 %v3575_v32  ;;  %v3184_v32 = vsel %vm2399_vm6, 1.0, %v3722_v0 }
 0x5ca   :  { %3297 = vmatprep.subr.bf16.mxu0 %v3576_v41  ;;  %3319 = vmatprep.subr.bf16.mxu1 %v3577_v43  ;;  %v3189_v41 = vsel %vm2422_vm7, 1.0, %v3722_v0  ;;  %v2403_v43 = vsel %vm2400_vm9, %v3184_v32, 0.0 }
 0x5cd   :  { %3298 = vmatpush3.bf16.msra.mxu0 %v3578_v47  ;;  %3320 = vmatpush3.bf16.msra.mxu1 %v3579_v48  ;;  %v2426_v47 = vsel %vm2423_vm10, %v3189_v41, 0.0 }
 0x5ce   :  { %3299 = vmatprep.subr.bf16.mxu0 %v3580_v50  ;;  %3321 = vmatprep.subr.bf16.mxu1 %v3581_v51  ;;  %v4122_v48 = vadd.f32 %v2426_v47, %v2403_v43  ;;  %v1832_v51 = vrot.slane %v3989_v12, %v1315_v54 }
 0x5d1   :  { %3300 = vmatpush3.bf16.msra.mxu0 %v3582_v55  ;;  %3322 = vmatpush3.bf16.msra.mxu1 %v3583_v57 }
 0x5d2   :  { %3301 = vmatprep.subr.bf16.mxu0 %v3584_v60  ;;  %3323 = vmatprep.subr.bf16.mxu1 %v3585_v61 }
 0x5d3   :  { %v1765_v10 = vpop.f32.mrb[20].mxu0  ;;  %v1806_v39 = vpop.f32.mrb[28].mxu1 }
 0x5d4   :  { %v1766_v16 = vadd.f32 %v1765_v10, %v1308_v3  ;;  %v1807_v56 = vadd.f32 %v1806_v39, %v1316_v4  ;;  %v1767_v46 = vpop.f32.mrb[21].mxu0  ;;  %v1808_v18 = vpop.f32.mrb[29].mxu1 }
 0x5d5   :  { %v1768_v19 = vadd.f32 %v1767_v46, %v1312_v11  ;;  %v1809_v20 = vadd.f32 %v1808_v18, %v1320_v17  ;;  %v1769_v24 = vpop.f32.mrb[22].mxu0  ;;  %v1810_v35 = vpop.f32.mrb[30].mxu1  ;;  %3302 = vmatpush3.bf16.msra.mxu0 %v3586_v8  ;;  %3324 = vmatpush3.bf16.msra.mxu1 %v3587_v9 }
 0x5d6   :  { %v1817_v14 = vmax.f32 %v1766_v16, 0.0  ;;  %v1819_v42 = vmax.f32 %v1807_v56, 0.0  ;;  %v1770_v31 = vpop.f32.mrb[23].mxu0  ;;  %v1811_v26 = vpop.f32.mrb[31].mxu1  ;;  %3303 = vmatprep.subr.bf16.mxu0 %v3588_v13  ;;  %3325 = vmatprep.subr.bf16.mxu1 %v3589_v15  ;;  %v2694_v56 = vrot.slane %v4097_v27, 5 }
 0x5d7   :  { %v1818_v33 = vmax.f32 %v1768_v19, 0.0  ;;  %v1820_v49 = vmax.f32 %v1809_v20, 0.0 }
 0x5d8   :  { %v1825_v40 = vpack.c.bf16 %v1817_v14, %v1817_v14  ;;  %v1827_v23 = vpack.c.bf16 %v1819_v42, %v1819_v42 }
 0x5d9   :  { %v1826_v36 = vpack.c.bf16 %v1818_v33, %v1818_v33  ;;  %v1828_v37 = vpack.c.bf16 %v1820_v49, %v1820_v49  ;;  %3304 = vmatpush3.bf16.msra.mxu0 %v3590_v29  ;;  %3326 = vmatpush3.bf16.msra.mxu1 %v3591_v45 }
 0x5da   :  { %3437 = vmatprep.subr.mxu0 %v3722_v0  ;;  %3442 = vmatprep.subr.mxu1 %v3722_v0 }
 0x5db   :  { %2329 = vmatprep.mubr.bf16.mxu0 %v1826_v36  ;;  %2369 = vmatprep.mubr.bf16.mxu1 %v1828_v37 }
 0x5dc   :  { %2330 = vmatmul.mubr.bf16.vlgmr.msra.gmra.mrb[28].mxu0 %v1825_v40  ;;  %2370 = vmatmul.mubr.bf16.vlgmr.msra.gmra.mrb[36].mxu1 %v1827_v23 }
 0x5dd   :  { %3438 = vmatpush3.msk.msra.mxu0 %vm2442_vm8, %v2437_v1  ;;  %3439 = vmatprep.mubr.msk.f32.mxu0 %vm3723_vm0, %v3722_v0 }
 0x5de   :  { %3443 = vmatpush3.msk.msra.mxu1 %vm2442_vm8, %v2437_v1  ;;  %3444 = vmatprep.mubr.msk.f32.mxu1 %vm3723_vm0, %v3722_v0 }
 0x5df   :  { %3452 = vmatprep.subr.mxu1 %v3722_v0  ;;  %3447 = vmatprep.subr.mxu0 %v3722_v0 }
 0x5e4   :  { %3440 = vmatmul.mubr.msk.f32.vlgmr.msra.gmra.mrb[32].mxu0 %vm2438_vm11, %v4122_v48 }
 0x5e5   :  { %3448 = vmatpush3.msk.msra.mxu0 %vm2442_vm8, %v2437_v1  ;;  %3449 = vmatprep.mubr.msk.f32.mxu0 %vm3723_vm0, %v3722_v0 }
 0x5e6   :  { %3457 = vmatprep.subr.mxu0 %v3722_v0 }
 0x68f   :  { %v3261_v44 = vpop.f32.mrb[24].mxu0  ;;  %v3283_v50 = vpop.f32.mrb[32].mxu1 }
 0x690   :  { %v3262_v28 = vpop.f32.mrb[25].mxu0  ;;  %v3284_v52 = vpop.f32.mrb[33].mxu1 }
 0x691   :  { %v3263_v53 = vadd.f32 %v3262_v28, %v3261_v44  ;;  %v3285_v7 = vadd.f32 %v3284_v52, %v3283_v50  ;;  %v3264_v55 = vpop.f32.mrb[26].mxu0  ;;  %v3286_v57 = vpop.f32.mrb[34].mxu1 }
 0x692   :  { %v3265_v59 = vpop.f32.mrb[27].mxu0  ;;  %v3287_v60 = vpop.f32.mrb[35].mxu1 }
 0x693   :  { %v2252_v61 = vadd.f32 %v3263_v53, %v1832_v51 }
 0x695   :  { %v2292_v2 = vadd.f32 %v3285_v7, %v2252_v61 }
 0x6af   :  { %v3305_v38 = vpop.f32.mrb[28].mxu0  ;;  %v3327_v3 = vpop.f32.mrb[36].mxu1 }
 0x6b0   :  { %v3306_v4 = vpop.f32.mrb[29].mxu0  ;;  %v3328_v5 = vpop.f32.mrb[37].mxu1 }
 0x6b1   :  { %v3307_v6 = vadd.f32 %v3306_v4, %v3305_v38  ;;  %v3329_v11 = vadd.f32 %v3328_v5, %v3327_v3  ;;  %v3308_v17 = vpop.f32.mrb[30].mxu0  ;;  %v3330_v8 = vpop.f32.mrb[38].mxu1  ;;  %v2953_v3 = vrot.slane %v4097_v27, %v3872_v30  ;;  %v2431_v5 = vrot.slane %v3989_v12, %v1319_v21 }
 0x6b2   :  { %v3309_v9 = vpop.f32.mrb[31].mxu0  ;;  %v3331_v54 = vpop.f32.mrb[39].mxu1 }
 0x6b3   :  { %v2332_v63 = vadd.f32 %v3307_v6, %v2292_v2 }
 0x6b5   :  { %v4135_v13 = vadd.f32 %v3329_v11, %v2332_v63 }
 0x6b7   :  { %2377 = vst [vmem:[%s4208_s8] sm:$0xff] %v4135_v13  ;;  %2774 = vrot.lane.b32.xlu1 %v4135_v13, %s3726_s3  ;;  %v2687_v15 = vadd.f32 %v2686_v34, %v4135_v13  ;;  %v2511_v39 = vpop.f32.mrb[32].mxu0  ;;  %s3728_s8 = smov 119   ;;  %v2432_v17 = vadd.f32 %v2431_v5, %v4135_v13 }
 0x6b8   :  { %v3441_v62 = vpop.f32.mrb[33].mxu0 }
 0x6b9   :  { %v2688_v10 = vsel %vm2438_vm11, %v2687_v15, -inf  ;;  %v2433_v9 = vmul.f32 %v2432_v17, %v4122_v48 }
 0x6ba   :  { %2689 = vmax.xlane.f32.xlu0 %v2688_v10 }
 0x6d0   :  { %2515 = vrot.lane.b32.xlu0 %v4122_v48, %s3726_s3 }
 0x6d4   :  { %2595 = vrot.lane.b32.xlu0 %v4122_v48, %s3727_s12 }
 0x6d8   :  { %2860 = vrot.lane.b32.xlu0 %v4135_v13, %s3727_s12 }
 0x729   :  { %v2775_v26 = vpop.permute.xlu1 %2774 }
 0x747   :  { %v2690_v25 = vpop.xlane.xlu0 %2689 }
 0x748   :  { %v2691_v16 = vsub.f32 %v2687_v15, %v2690_v25 }
 0x74a   :  { %v2692_v46 = vmul.f32 1.442695, %v2691_v16 }
 0x74b   :  { %v2516_v18 = vpop.permute.xlu0 %2515 }
 0x74c   :  { %3624 = vpow2.f32 %v2692_v46  ;;  %v4148_v58 = vmul.f32 %v2516_v18, %v2511_v39  ;;  %3445 = vmatmul.mubr.msk.f32.vlgmr.msra.gmra.mrb[40].mxu1 %vm2438_vm11, %v2516_v18 }
 0x74d   :  { %3453 = vmatpush3.msk.msra.mxu1 %vm2442_vm8, %v2694_v56  ;;  %3454 = vmatprep.mubr.msk.f32.mxu1 %vm3723_vm0, %v3722_v0 }
 0x74e   :  { %3462 = vmatprep.subr.mxu1 %v3722_v0  ;;  %v2519_v30 = vsel %vm2438_vm11, %v4148_v58, 0.0 }
 0x74f   :  { %v4155_v19 = vpop.permute.xlu0 %2595 }
 0x750   :  { %3450 = vmatmul.mubr.msk.f32.vlgmr.msra.gmra.mrb[34].mxu0 %vm2438_vm11, %v4155_v19 }
 0x751   :  { %3458 = vmatpush3.msk.msra.mxu0 %vm2442_vm8, %v2694_v56  ;;  %3459 = vmatprep.mubr.msk.f32.mxu0 %vm3723_vm0, %v3722_v0 }
 0x753   :  { %v2861_v51 = vpop.permute.xlu0 %2860 }
 0x756   :  { %v3625_v20 = vpop.eup %3624 }
 0x757   :  { %3455 = vmatmul.mubr.msk.f32.vlgmr.msra.gmra.mrb[42].mxu1 %vm2438_vm11, %v3625_v20 }
 0x758   :  { %3463 = vmatpush3.msk.msra.mxu1 %vm2442_vm8, %v2694_v56  ;;  %3464 = vmatprep.mubr.msk.f32.mxu1 %vm3723_vm0, %v3722_v0  ;;  %vm2967_vm0 = vcmp.lt.s32.totalorder %v3858_v22, 2 }
 0x81f   :  { %v2591_v24 = vpop.f32.mrb[40].mxu1 }
 0x820   :  { %v3446_v35 = vpop.f32.mrb[41].mxu1  ;;  %v2598_v54 = vmul.f32 %v4155_v19, %v2591_v24 }
 0x821   :  { %v3202_v35 = vsel %vm2967_vm0, 1.0, %v3722_v0 }
 0x822   :  { %v2599_v12 = vsel %vm2438_vm11, %v2598_v54, 0.0 }
 0x823   :  { %v2671_v1 = vpop.f32.mrb[34].mxu0 }
 0x824   :  { %v3451_v36 = vpop.f32.mrb[35].mxu0 }
 0x82a   :  { %v2766_v29 = vpop.f32.mrb[42].mxu1 }
 0x82b   :  { %3626 = vlog2.f32 %v2766_v29  ;;  %v3456_v45 = vpop.f32.mrb[43].mxu1 }
 0x835   :  { %v3627_v14 = vpop.eup %3626 }
 0x836   :  { %v2771_v42 = vmul.f32 0.6931472, %v3627_v14 }
 0x838   :  { %v2772_v31 = vadd.f32 %v2771_v42, %v2690_v25 }
 0x83a   :  { %v2777_v33 = vadd.f32 %v2775_v26, %v2772_v31 }
 0x83c   :  { %v2778_v49 = vsel %vm2438_vm11, %v2777_v33, -inf }
 0x83d   :  { %2779 = vmax.xlane.f32.xlu1 %v2778_v49 }
 0x84e   :  { %2946 = vrot.lane.b32.xlu1 %v4135_v13, %s3728_s8 }
 0x8ca   :  { %v2780_v37 = vpop.xlane.xlu1 %2779 }
 0x8cb   :  { %v2781_v40 = vsub.f32 %v2777_v33, %v2780_v37 }
 0x8cd   :  { %v2782_v23 = vmul.f32 1.442695, %v2781_v40 }
 0x8ce   :  { %v2947_v4 = vpop.permute.xlu1 %2946 }
 0x8cf   :  { %3628 = vpow2.f32 %v2782_v23 }
 0x8d9   :  { %v3629_v32 = vpop.eup %3628 }
 0x8da   :  { %3460 = vmatmul.mubr.msk.f32.vlgmr.msra.gmra.mrb[36].mxu0 %vm2438_vm11, %v3629_v32 }
 0x9ad   :  { %v2853_v41 = vpop.f32.mrb[36].mxu0 }
 0x9ae   :  { %3630 = vlog2.f32 %v2853_v41  ;;  %v3461_v43 = vpop.f32.mrb[37].mxu0 }
 0x9b8   :  { %v3631_v47 = vpop.eup %3630 }
 0x9b9   :  { %v2858_v44 = vmul.f32 0.6931472, %v3631_v47 }
 0x9bb   :  { %v2859_v50 = vadd.f32 %v2858_v44, %v2780_v37 }
 0x9bd   :  { %v2863_v28 = vadd.f32 %v2861_v51, %v2859_v50 }
 0x9bf   :  { %v2864_v52 = vsel %vm2438_vm11, %v2863_v28, -inf }
 0x9c0   :  { %2865 = vmax.xlane.f32.xlu0 %v2864_v52 }
 0x9d6   :  { %2675 = vrot.lane.b32.xlu0 %v4122_v48, %s3728_s8 }
 0xa4d   :  { %v2866_v53 = vpop.xlane.xlu0 %2865 }
 0xa4e   :  { %v2867_v7 = vsub.f32 %v2863_v28, %v2866_v53 }
 0xa50   :  { %v2868_v55 = vmul.f32 1.442695, %v2867_v7 }
 0xa51   :  { %v2676_v27 = vpop.permute.xlu0 %2675 }
 0xa52   :  { %3632 = vpow2.f32 %v2868_v55  ;;  %v2678_v63 = vmul.f32 %v2676_v27, %v2671_v1 }
 0xa54   :  { %v2679_v21 = vsel %vm2438_vm11, %v2678_v63, 0.0 }
 0xa5c   :  { %v3633_v57 = vpop.eup %3632 }
 0xa5d   :  { %3465 = vmatmul.mubr.msk.f32.vlgmr.msra.gmra.mrb[44].mxu1 %vm2438_vm11, %v3633_v57 }
 0xb30   :  { %v2939_v59 = vpop.f32.mrb[44].mxu1 }
 0xb31   :  { %3634 = vlog2.f32 %v2939_v59  ;;  %v3466_v60 = vpop.f32.mrb[45].mxu1 }
 0xb3b   :  { %v3635_v61 = vpop.eup %3634 }
 0xb3c   :  { %v2944_v2 = vmul.f32 0.6931472, %v3635_v61 }
 0xb3e   :  { %v2945_v38 = vadd.f32 %v2944_v2, %v2866_v53 }
 0xb40   :  { %v2949_v6 = vadd.f32 %v2947_v4, %v2945_v38 }
 0xb42   :  { %v2954_v11 = vadd.f32 %v2953_v3, %v2949_v6 }
 0xb44   :  { %v2955_v8 = vsel %vm2438_vm11, %v2954_v11, -inf }
 0xb45   :  { %2956 = vmax.xlane.f32.xlu1 %v2955_v8 }
 0xb49   :  { %2434 = vadd.xlane.f32.xlu1 %v2433_v9 }
 0xb4d   :  { %2520 = vadd.xlane.f32.xlu1 %v2519_v30 }
 0xb51   :  { %2600 = vadd.xlane.f32.xlu1 %v2599_v12 }
 0xb55   :  { %2680 = vadd.xlane.f32.xlu1 %v2679_v21 }
 0xbd2   :  { %v2957_v34 = vpop.xlane.xlu1 %2956 }
 0xbd3   :  { %v2958_v13 = vsub.f32 %v2954_v11, %v2957_v34 }
 0xbd5   :  { %v2959_v15 = vmul.f32 1.442695, %v2958_v13 }
 0xbd6   :  { %v2435_v39 = vpop.xlane.xlu1 %2434 }
 0xbd7   :  { %3636 = vpow2.f32 %v2959_v15 }
 0xbda   :  { %v2521_v62 = vpop.xlane.xlu1 %2520 }
 0xbdb   :  { %v2522_v56 = vadd.f32 %v2521_v62, %v2435_v39 }
 0xbde   :  { %v2601_v16 = vpop.xlane.xlu1 %2600 }
 0xbdf   :  { %v2602_v58 = vadd.f32 %v2601_v16, %v2522_v56 }
 0xbe1   :  { %v3637_v48 = vpop.eup %3636 }
 0xbe2   :  { %v2961_v10 = vsel %vm2438_vm11, %v3637_v48, 0.0  ;;  %v2681_v18 = vpop.xlane.xlu1 %2680 }
 0xbe3   :  { %2962 = vadd.xlane.f32.xlu0 %v2961_v10  ;;  %v2682_v20 = vadd.f32 %v2681_v18, %v2602_v58 }
 0xc70   :  { %v2963_v25 = vpop.xlane.xlu0 %2962 }
 0xc71   :  { %3638 = vlog2.f32 %v2963_v25 }
 0xc7b   :  { %v3639_v46 = vpop.eup %3638 }
 0xc7c   :  { %v2965_v19 = vmul.f32 0.6931472, %v3639_v46 }
 0xc7e   :  { %v2966_v24 = vadd.f32 %v2965_v19, %v2957_v34 }
 0xc80   :  { %v2970_v29 = vsub.f32 %v2682_v20, %v2966_v24 }
 0xc82   :  { %v2971_v45 = vmul.f32 %v3202_v35, %v2970_v29 }
 0xc84   :  { %v2973_v14 = vsel %vm2972_vm12, %v2971_v45, 0.0 }
 0xc85   :  { %2974 = vadd.xlane.f32.xlu1 %v2973_v14 }
 0xd12   :  { %v2975_v42 = vpop.xlane.xlu1 %2974 }
 0xd13   :  { %v2976_v31 = vrot.slane %v2975_v42, 4 }
 0xd15   :  { %v2977_v26 = vadd.f32 %v2976_v31, %v2975_v42 }
 0xd17   :  { %v2978_v33 = vrot.slane %v2977_v26, 2 }
 0xd19   :  { %v2979_v49 = vadd.f32 %v2978_v33, %v2977_v26 }
 0xd1b   :  { %v2980_v1 = vrot.slane %v2979_v49, 1 }
 0xd1d   :  { %v2981_v36 = vadd.f32 %v2980_v1, %v2979_v49 }
 0xd1f   :  { %3467 = vpush %v2981_v36 }
 0xd50   :  { %s3468_s13 = spop %3467 }
 0xd51   :  { %s2983_s14 = ssub.f32 0.0, %s3468_s13 }
 0xd53   :  { %2985 = sst [smem:[#allocation9]] %s2983_s14 }
 0xd54   :  { %3706 = shalt.err (!%p3703_p9)
}
 0xd55   :  { %s3729_s6 = smov [#allocation9]  }
 0xd56   :  { %2995 = dma.smem_to_hbm %s3729_s6, 16, %s4209_s9, [#allocation4]  }
 0xd57   :  { %3713 = dma.done.wait [#allocation4], 16  }
 0xd58   :  { %3714 = vsyncadd [#allocation4], 4294967280 }
 0xd59   :  { %3001 = sfence }
 0xd5a   :  { %3002 = vsyncpa [#allocation3], 1 }
 0xd5b   :  { %3003 = vsyncpa [#allocation8], 1 }
 0xd5c   :  { %3004 = vsyncpa [#allocation4], 1 }
 0xd5d   :  { %3005 = vsyncpa [#allocation5], 1 }

</bundles_post_ra>
